<compile_context>
chip_gen: v7x
topology: tpu7x:2x2x1
jax: 0.10.0
libtpu: 0.0.40
codegen_flags: <defaults>
</compile_context>

<pallas_src>
import jax
import jax.numpy as jnp
from jax.experimental import pallas as pl
from jax.experimental.pallas import tpu as pltpu


def _round_up(x, m):
    return ((x + m - 1) // m) * m


# ---------------------------------------------------------------------------
# Kernel factory: one batch tile through the whole MLP.
# All segment offsets / sizes are static Python ints closed over here.
# ---------------------------------------------------------------------------
def make_fused_kernel(seg_offs, seg_dims_pad, h_pad):
    n_seg = len(seg_dims_pad)

    def kernel(
        x_ref,                     # (TILE_B, D_in_pad)      bf16 fused input
        w_in_ref, b_in_ref,        # (D_in_pad, H_pad) bf16,  (4, H_pad) f32
        w_sh1_ref, b_sh1_ref,      # (4*H_pad, 2*H_pad) bf16, (1, 2*H_pad) f32
        w_sh2_ref, b_sh2_ref,      # (2*H_pad, H_pad) bf16,   (1, H_pad) f32
        w_out_ref, b_out_ref,      # (H_pad, D_out_pad) bf16, (1, D_out_pad) f32
        o_ref,                     # (TILE_B, D_out_pad)     bf16 output slab
    ):
        x = x_ref[...]             # bf16
        b_in = b_in_ref[...]       # (4, H_pad) f32

        # Input projections + shared_fc1, decomposed per segment:
        #   h_i  = relu(x_seg_i @ W_i + b_i)          (lane-aligned segment)
        #   h2  += h_i @ W_sh1[rows of segment i]     (f32 accumulation)
        h2_acc = None
        for i in range(n_seg):
            off, dp = seg_offs[i], seg_dims_pad[i]
            hi = jnp.dot(x[:, off:off + dp], w_in_ref[off:off + dp, :],
                         preferred_element_type=jnp.float32)
            hi = jnp.maximum(hi + b_in[i:i + 1, :], 0.0).astype(jnp.bfloat16)
            part = jnp.dot(hi, w_sh1_ref[i * h_pad:(i + 1) * h_pad, :],
                           preferred_element_type=jnp.float32)
            h2_acc = part if h2_acc is None else h2_acc + part

        h2 = jnp.maximum(h2_acc + b_sh1_ref[...], 0.0).astype(jnp.bfloat16)

        h3 = jnp.dot(h2, w_sh2_ref[...], preferred_element_type=jnp.float32)
        h3 = jnp.maximum(h3 + b_sh2_ref[...], 0.0).astype(jnp.bfloat16)

        y = jnp.dot(h3, w_out_ref[...], preferred_element_type=jnp.float32)
        o_ref[...] = (y + b_out_ref[...]).astype(o_ref.dtype)

    return kernel


# ---------------------------------------------------------------------------
# Parameter construction (PyTorch nn.Linear default init).
# ---------------------------------------------------------------------------
def init_linear(key, in_features, out_features):
    """U(-1/sqrt(in), 1/sqrt(in)); W pre-transposed to (in, out), bias (1, out)."""
    kw, kb = jax.random.split(key)
    bound = 1.0 / jnp.sqrt(jnp.float32(in_features))
    w = jax.random.uniform(kw, (in_features, out_features), jnp.float32, -bound, bound)
    b = jax.random.uniform(kb, (1, out_features), jnp.float32, -bound, bound)
    return w, b


def make_params(key, hidden_size, num_players, publ_dim, priv_dim, legal_dim):
    keys = jax.random.split(key, 11)
    params = {}
    params["publ_fc1"] = init_linear(keys[0], publ_dim * num_players, hidden_size)
    params["priv_fc1"] = init_linear(keys[1], priv_dim * num_players, hidden_size)
    params["legal_fc1"] = init_linear(keys[2], legal_dim * num_players, hidden_size)
    params["act_fc1"] = init_linear(keys[3], num_players, hidden_size)
    params["shared_fc1"] = init_linear(keys[4], hidden_size * 4, hidden_size * 2)
    params["shared_fc2"] = init_linear(keys[5], hidden_size * 2, hidden_size)
    params["out_publ"] = init_linear(keys[6], hidden_size, publ_dim * num_players)
    params["out_priv"] = init_linear(keys[7], hidden_size, priv_dim * num_players)
    params["out_legal"] = init_linear(keys[8], hidden_size, legal_dim * num_players)
    params["out_reward"] = init_linear(keys[9], hidden_size, 1)
    params["out_terminal"] = init_linear(keys[10], hidden_size, 1)
    # TODO(synk): log_{publ,priv,legal,reward,terminal}_lambda exist in __init__
    # but only enter the loss, not forward(), so they are not modeled here.
    return params


# ---------------------------------------------------------------------------
# One-time packing (hoisted out of the forward path): pad hidden/segments to
# lane-aligned sizes, stack segment weights, fuse the 5 output heads.
# ---------------------------------------------------------------------------
def pack_params(params, num_players, publ_dim, priv_dim, legal_dim, hidden_size):
    H = hidden_size
    H_pad = _round_up(H, 128)

    in_names = ("publ_fc1", "priv_fc1", "legal_fc1", "act_fc1")
    in_dims = [publ_dim * num_players, priv_dim * num_players,
               legal_dim * num_players, num_players]
    in_dims_pad = [_round_up(d, 128) for d in in_dims]
    d_in_pad = sum(in_dims_pad)
    seg_offs = []
    off = 0
    for dp in in_dims_pad:
        seg_offs.append(off)
        off += dp

    # Per-segment input projections stacked vertically (no zero blocks).
    w_in = jnp.zeros((d_in_pad, H_pad), jnp.float32)
    b_in = jnp.zeros((4, H_pad), jnp.float32)
    for i, (name, d) in enumerate(zip(in_names, in_dims)):
        w, b = params[name]
        w_in = w_in.at[seg_offs[i]:seg_offs[i] + d, :H].set(w)
        b_in = b_in.at[i, :H].set(b[0])

    # shared_fc1 (4H, 2H) -> (4*H_pad, 2*H_pad), segment i's rows at i*H_pad.
    w_sh1_o, b_sh1_o = params["shared_fc1"]
    w_sh1 = jnp.zeros((4 * H_pad, 2 * H_pad), jnp.float32)
    for i in range(4):
        w_sh1 = w_sh1.at[i * H_pad:i * H_pad + H, :2 * H].set(
            w_sh1_o[i * H:(i + 1) * H, :])
    b_sh1 = jnp.zeros((1, 2 * H_pad), jnp.float32).at[:, :2 * H].set(b_sh1_o)

    # shared_fc2 (2H, H) -> (2*H_pad, H_pad).
    w_sh2_o, b_sh2_o = params["shared_fc2"]
    w_sh2 = jnp.zeros((2 * H_pad, H_pad), jnp.float32).at[:2 * H, :H].set(w_sh2_o)
    b_sh2 = jnp.zeros((1, H_pad), jnp.float32).at[:, :H].set(b_sh2_o)

    # Output heads stacked column-wise into one lane-dense slab.
    head_names = ("out_publ", "out_priv", "out_legal", "out_reward", "out_terminal")
    w_out_o = jnp.concatenate([params[n][0] for n in head_names], axis=1)
    b_out_o = jnp.concatenate([params[n][1] for n in head_names], axis=1)
    d_out = w_out_o.shape[1]
    d_out_pad = _round_up(d_out, 128)
    w_out = jnp.zeros((H_pad, d_out_pad), jnp.float32).at[:H, :d_out].set(w_out_o)
    b_out = jnp.zeros((1, d_out_pad), jnp.float32).at[:, :d_out].set(b_out_o)

    return dict(
        w_in=w_in.astype(jnp.bfloat16), b_in=b_in,
        w_sh1=w_sh1.astype(jnp.bfloat16), b_sh1=b_sh1,
        w_sh2=w_sh2.astype(jnp.bfloat16), b_sh2=b_sh2,
        w_out=w_out.astype(jnp.bfloat16), b_out=b_out,
        # static metadata
        num_players=num_players, publ_dim=publ_dim, priv_dim=priv_dim,
        legal_dim=legal_dim, hidden_size=H, h_pad=H_pad,
        in_dims=in_dims, in_dims_pad=in_dims_pad, seg_offs=seg_offs,
        d_in_pad=d_in_pad, d_out=d_out, d_out_pad=d_out_pad,
    )


# ---------------------------------------------------------------------------
# Wrapper: batch-gridded pallas_call with VMEM-resident weights.
# ---------------------------------------------------------------------------
def model_forward(publ_s_cur, priv_s_cur, legal_actions_curr, actions, packed,
                  tile_b=512):
    B = publ_s_cur.shape[0]
    N = packed["num_players"]
    publ_dim, priv_dim, legal_dim = packed["publ_dim"], packed["priv_dim"], packed["legal_dim"]
    h_pad = packed["h_pad"]
    d_in_pad = packed["d_in_pad"]
    d_out_pad = packed["d_out_pad"]
    in_dims_pad = packed["in_dims_pad"]
    seg_offs = packed["seg_offs"]

    # --- batch tiling (multiple of 16 for bf16 sublane packing) -------------
    tile_b = max(16, min(tile_b, _round_up(B, 16)))
    # v7x has 2 TensorCores: if the whole batch fits in one tile but is large
    # enough to split into >= 2 multiple-of-16 tiles, halve the tile.
    if _round_up(B, 16) <= tile_b and B >= 32:
        tile_b = _round_up((B + 1) // 2, 16)
    b_pad = _round_up(B, tile_b)

    # --- fused input, built directly in bf16, per-segment lane padding ------
    segs = [publ_s_cur.reshape(B, -1), priv_s_cur.reshape(B, -1),
            legal_actions_curr.reshape(B, -1), actions.reshape(B, -1)]
    segs = [jnp.pad(s.astype(jnp.bfloat16), ((0, 0), (0, dp - s.shape[1])))
            for s, dp in zip(segs, in_dims_pad)]
    x = jnp.concatenate(segs, axis=1)
    x = jnp.pad(x, ((0, b_pad - B), (0, 0)))

    weight_list = [packed[k] for k in
                   ("w_in", "b_in", "w_sh1", "b_sh1", "w_sh2", "b_sh2",
                    "w_out", "b_out")]

    kernel = make_fused_kernel(seg_offs, in_dims_pad, h_pad)

    # --- explicit VMEM budget (weights resident + double-buffered act I/O) --
    weight_bytes = sum(int(w.size) * int(w.dtype.itemsize) for w in weight_list)
    act_bytes = 2 * (tile_b * d_in_pad * 2) + 2 * (tile_b * d_out_pad * 2)
    scratch_bytes = 4 * tile_b * 4 * h_pad * 4   # headroom for f32 intermediates
    est = 2 * weight_bytes + act_bytes + scratch_bytes
    vmem_limit = int(min(max(est + (8 << 20), 32 << 20), 64 << 20))

    grid = (b_pad // tile_b,)
    out_specs = pl.BlockSpec((tile_b, d_out_pad), lambda i: (i, 0))

    def run(single_buffer_weights):
        if single_buffer_weights:
            def wspec(shape):
                return pl.BlockSpec(shape, lambda i: (0, 0),
                                    pipeline_mode=pl.Buffered(1))
        else:
            def wspec(shape):
                return pl.BlockSpec(shape, lambda i: (0, 0))
        in_specs = [pl.BlockSpec((tile_b, d_in_pad), lambda i: (i, 0))]
        in_specs += [wspec(w.shape) for w in weight_list]
        return pl.pallas_call(
            kernel,
            out_shape=jax.ShapeDtypeStruct((b_pad, d_out_pad), jnp.bfloat16),
            grid=grid,
            in_specs=in_specs,
            out_specs=out_specs,
            compiler_params=pltpu.CompilerParams(
                dimension_semantics=("parallel",),
                vmem_limit_bytes=vmem_limit),
        )(x, *weight_list)

    try:
        # Weights/biases have constant index_maps -> request single buffering.
        slab = run(True)
    except Exception:
        # Fallback if this JAX build rejects pipeline_mode=pl.Buffered(1).
        slab = run(False)

    slab = slab[:B].astype(jnp.float32)
    d0 = N * publ_dim
    d1 = N * priv_dim
    d2 = N * legal_dim
    publ_nxt = slab[:, :d0].reshape(B, N, publ_dim)
    priv_nxt = slab[:, d0:d0 + d1].reshape(B, N, priv_dim)
    legal_nxt = slab[:, d0 + d1:d0 + d1 + d2].reshape(B, N, legal_dim)
    reward = slab[:, d0 + d1 + d2:d0 + d1 + d2 + 1]
    terminal = slab[:, d0 + d1 + d2 + 1:d0 + d1 + d2 + 2]
    return publ_nxt, priv_nxt, legal_nxt, reward, terminal


# ---------------------------------------------------------------------------
# Pure-JAX references (f32 exact; bf16-matmul variant mirrors kernel numerics).
# ---------------------------------------------------------------------------
def model_forward_ref(publ_s_cur, priv_s_cur, legal_actions_curr, actions, params,
                      matmul_dtype=jnp.float32):
    B, N, publ_dim = publ_s_cur.shape
    priv_dim = priv_s_cur.shape[-1]
    legal_dim = legal_actions_curr.shape[-1]

    def lin(x, name):
        w, b = params[name]
        return jnp.dot(x.astype(matmul_dtype), w.astype(matmul_dtype),
                       preferred_element_type=jnp.float32) + b

    h_publ = jax.nn.relu(lin(publ_s_cur.reshape(B, -1), "publ_fc1"))
    h_priv = jax.nn.relu(lin(priv_s_cur.reshape(B, -1), "priv_fc1"))
    h_legal = jax.nn.relu(lin(legal_actions_curr.reshape(B, -1), "legal_fc1"))
    h_act = jax.nn.relu(lin(actions.reshape(B, -1), "act_fc1"))
    x = jnp.concatenate([h_publ, h_priv, h_legal, h_act], axis=1)
    x = jax.nn.relu(lin(x, "shared_fc1"))
    x = jax.nn.relu(lin(x, "shared_fc2"))
    return (
        lin(x, "out_publ").reshape(B, N, publ_dim),
        lin(x, "out_priv").reshape(B, N, priv_dim),
        lin(x, "out_legal").reshape(B, N, legal_dim),
        lin(x, "out_reward").reshape(B, 1),
        lin(x, "out_terminal").reshape(B, 1),
    )


if __name__ == "__main__":
    # Small, forward-consistent shapes.
    B = 4
    num_players = 2
    publ_dim = 16
    priv_dim = 24
    legal_dim = 10
    hidden_size = 32

    key = jax.random.PRNGKey(0)
    k_params, k_publ, k_priv, k_legal, k_act = jax.random.split(key, 5)

    params = make_params(k_params, hidden_size, num_players,
                         publ_dim, priv_dim, legal_dim)
    # Packing happens once, outside the forward path.
    packed = pack_params(params, num_players, publ_dim, priv_dim, legal_dim,
                         hidden_size)

    publ_s_cur = jax.random.normal(k_publ, (B, num_players, publ_dim), jnp.float32)
    priv_s_cur = jax.random.normal(k_priv, (B, num_players, priv_dim), jnp.float32)
    legal_actions_curr = (
        jax.random.uniform(k_legal, (B, num_players, legal_dim)) > 0.5
    ).astype(jnp.float32)
    # NOTE: actions are consumed as raw floats, exactly as in the torch forward().
    actions = jax.random.normal(k_act, (B, num_players), jnp.float32)

    outs = model_forward(publ_s_cur, priv_s_cur, legal_actions_curr, actions, packed)
    outs = jax.block_until_ready(outs)

    # Tight check vs a reference using the same bf16-matmul recipe (output also
    # rounded to bf16 to mirror the bf16 output slab).
    refs_bf16 = model_forward_ref(publ_s_cur, priv_s_cur, legal_actions_curr,
                                  actions, params, matmul_dtype=jnp.bfloat16)
    # Loose semantic check vs the exact f32 reference.
    refs_f32 = model_forward_ref(publ_s_cur, priv_s_cur, legal_actions_curr,
                                 actions, params, matmul_dtype=jnp.float32)

    for o, rb, rf in zip(outs, refs_bf16, refs_f32):
        assert o.shape == rb.shape, (o.shape, rb.shape)
        rb_q = rb.astype(jnp.bfloat16).astype(jnp.float32)
        assert jnp.allclose(o, rb_q, atol=2e-2, rtol=2e-2), \
            float(jnp.max(jnp.abs(o - rb_q)))
        assert jnp.allclose(o, rf, atol=1e-1, rtol=1e-1), \
            float(jnp.max(jnp.abs(o - rf)))

    print("KERNEL_OK")
</pallas_src>

<mosaic_0001>
module attributes {stable_mosaic.version = 11 : i64} {
  func.func @kernel(%arg0: i32, %arg1: memref<16x512xbf16, #tpu.memory_space<vmem>>, %arg2: memref<512x128xbf16, #tpu.memory_space<vmem>>, %arg3: memref<4x128xf32, #tpu.memory_space<vmem>>, %arg4: memref<512x256xbf16, #tpu.memory_space<vmem>>, %arg5: memref<1x256xf32, #tpu.memory_space<vmem>>, %arg6: memref<256x128xbf16, #tpu.memory_space<vmem>>, %arg7: memref<1x128xf32, #tpu.memory_space<vmem>>, %arg8: memref<128x128xbf16, #tpu.memory_space<vmem>>, %arg9: memref<1x128xf32, #tpu.memory_space<vmem>>, %arg10: memref<16x128xbf16, #tpu.memory_space<vmem>>) attributes {dimension_semantics = [#tpu.dimension_semantics<parallel>], iteration_bounds = array<i64: 1>, scalar_prefetch = 0 : i64, scratch_operands = 0 : i64, tpu.core_type = #tpu.core_type<tc>, window_params = [{transform_indices = @transform_0, window_bounds = array<i64: 16, 512>}, {pipeline_mode = #tpu.pipeline_mode<synchronous>, transform_indices = @transform_1, window_bounds = array<i64: 512, 128>}, {pipeline_mode = #tpu.pipeline_mode<synchronous>, transform_indices = @transform_2, window_bounds = array<i64: 4, 128>}, {pipeline_mode = #tpu.pipeline_mode<synchronous>, transform_indices = @transform_3, window_bounds = array<i64: 512, 256>}, {pipeline_mode = #tpu.pipeline_mode<synchronous>, transform_indices = @transform_4, window_bounds = array<i64: 1, 256>}, {pipeline_mode = #tpu.pipeline_mode<synchronous>, transform_indices = @transform_5, window_bounds = array<i64: 256, 128>}, {pipeline_mode = #tpu.pipeline_mode<synchronous>, transform_indices = @transform_6, window_bounds = array<i64: 1, 128>}, {pipeline_mode = #tpu.pipeline_mode<synchronous>, transform_indices = @transform_7, window_bounds = array<i64: 128, 128>}, {pipeline_mode = #tpu.pipeline_mode<synchronous>, transform_indices = @transform_8, window_bounds = array<i64: 1, 128>}, {transform_indices = @transform_9, window_bounds = array<i64: 16, 128>}]} {
    %c0 = arith.constant 0 : index
    %c0_0 = arith.constant 0 : index
    %0 = vector.load %arg1[%c0, %c0_0] : memref<16x512xbf16, #tpu.memory_space<vmem>>, vector<16x512xbf16>
    %c0_1 = arith.constant 0 : index
    %c0_2 = arith.constant 0 : index
    %1 = vector.load %arg3[%c0_1, %c0_2] : memref<4x128xf32, #tpu.memory_space<vmem>>, vector<4x128xf32>
    %2 = vector.extract_strided_slice %0 {offsets = [0, 0], sizes = [16, 128], strides = [1, 1]} : vector<16x512xbf16> to vector<16x128xbf16>
    %c0_3 = arith.constant 0 : index
    %c0_4 = arith.constant 0 : index
    %3 = vector.load %arg2[%c0_3, %c0_4] : memref<512x128xbf16, #tpu.memory_space<vmem>>, vector<128x128xbf16>
    %cst = arith.constant dense<0.000000e+00> : vector<16x128xf32>
    %4 = tpu.matmul %2, %3, %cst {dimension_numbers = #tpu.dot_dimension_numbers<[1], [0], [0], [1], [0, 0, 1, 1], [], []>} : vector<16x128xbf16>, vector<128x128xbf16>, vector<16x128xf32> -> vector<16x128xf32>
    %5 = vector.extract_strided_slice %1 {offsets = [0, 0], sizes = [1, 128], strides = [1, 1]} : vector<4x128xf32> to vector<1x128xf32>
    %6 = vector.broadcast %5 : vector<1x128xf32> to vector<16x128xf32>
    %7 = arith.addf %4, %6 : vector<16x128xf32>
    %cst_5 = arith.constant 0.000000e+00 : f32
    %8 = vector.broadcast %cst_5 : f32 to vector<16x128xf32>
    %9 = arith.maximumf %7, %8 : vector<16x128xf32>
    %10 = arith.truncf %9 : vector<16x128xf32> to vector<16x128xbf16>
    %c0_6 = arith.constant 0 : index
    %c0_7 = arith.constant 0 : index
    %11 = vector.load %arg4[%c0_6, %c0_7] : memref<512x256xbf16, #tpu.memory_space<vmem>>, vector<128x256xbf16>
    %cst_8 = arith.constant dense<0.000000e+00> : vector<16x256xf32>
    %12 = tpu.matmul %10, %11, %cst_8 {dimension_numbers = #tpu.dot_dimension_numbers<[1], [0], [0], [1], [0, 0, 1, 1], [], []>} : vector<16x128xbf16>, vector<128x256xbf16>, vector<16x256xf32> -> vector<16x256xf32>
    %13 = vector.extract_strided_slice %0 {offsets = [0, 128], sizes = [16, 128], strides = [1, 1]} : vector<16x512xbf16> to vector<16x128xbf16>
    %c128 = arith.constant 128 : index
    %c0_9 = arith.constant 0 : index
    %14 = vector.load %arg2[%c128, %c0_9] : memref<512x128xbf16, #tpu.memory_space<vmem>>, vector<128x128xbf16>
    %cst_10 = arith.constant dense<0.000000e+00> : vector<16x128xf32>
    %15 = tpu.matmul %13, %14, %cst_10 {dimension_numbers = #tpu.dot_dimension_numbers<[1], [0], [0], [1], [0, 0, 1, 1], [], []>} : vector<16x128xbf16>, vector<128x128xbf16>, vector<16x128xf32> -> vector<16x128xf32>
    %16 = vector.extract_strided_slice %1 {offsets = [1, 0], sizes = [1, 128], strides = [1, 1]} : vector<4x128xf32> to vector<1x128xf32>
    %17 = vector.broadcast %16 : vector<1x128xf32> to vector<16x128xf32>
    %18 = arith.addf %15, %17 : vector<16x128xf32>
    %cst_11 = arith.constant 0.000000e+00 : f32
    %19 = vector.broadcast %cst_11 : f32 to vector<16x128xf32>
    %20 = arith.maximumf %18, %19 : vector<16x128xf32>
    %21 = arith.truncf %20 : vector<16x128xf32> to vector<16x128xbf16>
    %c128_12 = arith.constant 128 : index
    %c0_13 = arith.constant 0 : index
    %22 = vector.load %arg4[%c128_12, %c0_13] : memref<512x256xbf16, #tpu.memory_space<vmem>>, vector<128x256xbf16>
    %cst_14 = arith.constant dense<0.000000e+00> : vector<16x256xf32>
    %23 = tpu.matmul %21, %22, %cst_14 {dimension_numbers = #tpu.dot_dimension_numbers<[1], [0], [0], [1], [0, 0, 1, 1], [], []>} : vector<16x128xbf16>, vector<128x256xbf16>, vector<16x256xf32> -> vector<16x256xf32>
    %24 = arith.addf %12, %23 : vector<16x256xf32>
    %25 = vector.extract_strided_slice %0 {offsets = [0, 256], sizes = [16, 128], strides = [1, 1]} : vector<16x512xbf16> to vector<16x128xbf16>
    %c256 = arith.constant 256 : index
    %c0_15 = arith.constant 0 : index
    %26 = vector.load %arg2[%c256, %c0_15] : memref<512x128xbf16, #tpu.memory_space<vmem>>, vector<128x128xbf16>
    %cst_16 = arith.constant dense<0.000000e+00> : vector<16x128xf32>
    %27 = tpu.matmul %25, %26, %cst_16 {dimension_numbers = #tpu.dot_dimension_numbers<[1], [0], [0], [1], [0, 0, 1, 1], [], []>} : vector<16x128xbf16>, vector<128x128xbf16>, vector<16x128xf32> -> vector<16x128xf32>
    %28 = vector.extract_strided_slice %1 {offsets = [2, 0], sizes = [1, 128], strides = [1, 1]} : vector<4x128xf32> to vector<1x128xf32>
    %29 = vector.broadcast %28 : vector<1x128xf32> to vector<16x128xf32>
    %30 = arith.addf %27, %29 : vector<16x128xf32>
    %cst_17 = arith.constant 0.000000e+00 : f32
    %31 = vector.broadcast %cst_17 : f32 to vector<16x128xf32>
    %32 = arith.maximumf %30, %31 : vector<16x128xf32>
    %33 = arith.truncf %32 : vector<16x128xf32> to vector<16x128xbf16>
    %c256_18 = arith.constant 256 : index
    %c0_19 = arith.constant 0 : index
    %34 = vector.load %arg4[%c256_18, %c0_19] : memref<512x256xbf16, #tpu.memory_space<vmem>>, vector<128x256xbf16>
    %cst_20 = arith.constant dense<0.000000e+00> : vector<16x256xf32>
    %35 = tpu.matmul %33, %34, %cst_20 {dimension_numbers = #tpu.dot_dimension_numbers<[1], [0], [0], [1], [0, 0, 1, 1], [], []>} : vector<16x128xbf16>, vector<128x256xbf16>, vector<16x256xf32> -> vector<16x256xf32>
    %36 = arith.addf %24, %35 : vector<16x256xf32>
    %37 = vector.extract_strided_slice %0 {offsets = [0, 384], sizes = [16, 128], strides = [1, 1]} : vector<16x512xbf16> to vector<16x128xbf16>
    %c384 = arith.constant 384 : index
    %c0_21 = arith.constant 0 : index
    %38 = vector.load %arg2[%c384, %c0_21] : memref<512x128xbf16, #tpu.memory_space<vmem>>, vector<128x128xbf16>
    %cst_22 = arith.constant dense<0.000000e+00> : vector<16x128xf32>
    %39 = tpu.matmul %37, %38, %cst_22 {dimension_numbers = #tpu.dot_dimension_numbers<[1], [0], [0], [1], [0, 0, 1, 1], [], []>} : vector<16x128xbf16>, vector<128x128xbf16>, vector<16x128xf32> -> vector<16x128xf32>
    %40 = vector.extract_strided_slice %1 {offsets = [3, 0], sizes = [1, 128], strides = [1, 1]} : vector<4x128xf32> to vector<1x128xf32>
    %41 = vector.broadcast %40 : vector<1x128xf32> to vector<16x128xf32>
    %42 = arith.addf %39, %41 : vector<16x128xf32>
    %cst_23 = arith.constant 0.000000e+00 : f32
    %43 = vector.broadcast %cst_23 : f32 to vector<16x128xf32>
    %44 = arith.maximumf %42, %43 : vector<16x128xf32>
    %45 = arith.truncf %44 : vector<16x128xf32> to vector<16x128xbf16>
    %c384_24 = arith.constant 384 : index
    %c0_25 = arith.constant 0 : index
    %46 = vector.load %arg4[%c384_24, %c0_25] : memref<512x256xbf16, #tpu.memory_space<vmem>>, vector<128x256xbf16>
    %cst_26 = arith.constant dense<0.000000e+00> : vector<16x256xf32>
    %47 = tpu.matmul %45, %46, %cst_26 {dimension_numbers = #tpu.dot_dimension_numbers<[1], [0], [0], [1], [0, 0, 1, 1], [], []>} : vector<16x128xbf16>, vector<128x256xbf16>, vector<16x256xf32> -> vector<16x256xf32>
    %48 = arith.addf %36, %47 : vector<16x256xf32>
    %c0_27 = arith.constant 0 : index
    %c0_28 = arith.constant 0 : index
    %49 = vector.load %arg5[%c0_27, %c0_28] : memref<1x256xf32, #tpu.memory_space<vmem>>, vector<1x256xf32>
    %50 = vector.broadcast %49 : vector<1x256xf32> to vector<16x256xf32>
    %51 = arith.addf %48, %50 : vector<16x256xf32>
    %cst_29 = arith.constant 0.000000e+00 : f32
    %52 = vector.broadcast %cst_29 : f32 to vector<16x256xf32>
    %53 = arith.maximumf %51, %52 : vector<16x256xf32>
    %54 = arith.truncf %53 : vector<16x256xf32> to vector<16x256xbf16>
    %c0_30 = arith.constant 0 : index
    %c0_31 = arith.constant 0 : index
    %55 = vector.load %arg6[%c0_30, %c0_31] : memref<256x128xbf16, #tpu.memory_space<vmem>>, vector<256x128xbf16>
    %cst_32 = arith.constant dense<0.000000e+00> : vector<16x128xf32>
    %56 = tpu.matmul %54, %55, %cst_32 {dimension_numbers = #tpu.dot_dimension_numbers<[1], [0], [0], [1], [0, 0, 1, 1], [], []>} : vector<16x256xbf16>, vector<256x128xbf16>, vector<16x128xf32> -> vector<16x128xf32>
    %c0_33 = arith.constant 0 : index
    %c0_34 = arith.constant 0 : index
    %57 = vector.load %arg7[%c0_33, %c0_34] : memref<1x128xf32, #tpu.memory_space<vmem>>, vector<1x128xf32>
    %58 = vector.broadcast %57 : vector<1x128xf32> to vector<16x128xf32>
    %59 = arith.addf %56, %58 : vector<16x128xf32>
    %cst_35 = arith.constant 0.000000e+00 : f32
    %60 = vector.broadcast %cst_35 : f32 to vector<16x128xf32>
    %61 = arith.maximumf %59, %60 : vector<16x128xf32>
    %62 = arith.truncf %61 : vector<16x128xf32> to vector<16x128xbf16>
    %c0_36 = arith.constant 0 : index
    %c0_37 = arith.constant 0 : index
    %63 = vector.load %arg8[%c0_36, %c0_37] : memref<128x128xbf16, #tpu.memory_space<vmem>>, vector<128x128xbf16>
    %cst_38 = arith.constant dense<0.000000e+00> : vector<16x128xf32>
    %64 = tpu.matmul %62, %63, %cst_38 {dimension_numbers = #tpu.dot_dimension_numbers<[1], [0], [0], [1], [0, 0, 1, 1], [], []>} : vector<16x128xbf16>, vector<128x128xbf16>, vector<16x128xf32> -> vector<16x128xf32>
    %c0_39 = arith.constant 0 : index
    %c0_40 = arith.constant 0 : index
    %65 = vector.load %arg9[%c0_39, %c0_40] : memref<1x128xf32, #tpu.memory_space<vmem>>, vector<1x128xf32>
    %66 = vector.broadcast %65 : vector<1x128xf32> to vector<16x128xf32>
    %67 = arith.addf %64, %66 : vector<16x128xf32>
    %68 = arith.truncf %67 : vector<16x128xf32> to vector<16x128xbf16>
    %c0_41 = arith.constant 0 : index
    %c0_42 = arith.constant 0 : index
    %69 = vector.load %arg10[%c0_41, %c0_42] : memref<16x128xbf16, #tpu.memory_space<vmem>>, vector<16x128xbf16>
    tpu.vector_store %arg10[%c0_41, %c0_42], %68 {strides = array<i32>} : memref<16x128xbf16, #tpu.memory_space<vmem>>, vector<16x128xbf16>,
    return
  }
  func.func @transform_0(%arg0: i32) -> (i32, i32) {
    %c0_i32 = arith.constant 0 : i32
    %c0_i32_0 = arith.constant 0 : i32
    return %arg0, %c0_i32 : i32, i32
  }
  func.func @transform_1(%arg0: i32) -> (i32, i32) {
    %c0_i32 = arith.constant 0 : i32
    %c0_i32_0 = arith.constant 0 : i32
    %c0_i32_1 = arith.constant 0 : i32
    return %c0_i32, %c0_i32_0 : i32, i32
  }
  func.func @transform_2(%arg0: i32) -> (i32, i32) {
    %c0_i32 = arith.constant 0 : i32
    %c0_i32_0 = arith.constant 0 : i32
    %c0_i32_1 = arith.constant 0 : i32
    return %c0_i32, %c0_i32_0 : i32, i32
  }
  func.func @transform_3(%arg0: i32) -> (i32, i32) {
    %c0_i32 = arith.constant 0 : i32
    %c0_i32_0 = arith.constant 0 : i32
    %c0_i32_1 = arith.constant 0 : i32
    return %c0_i32, %c0_i32_0 : i32, i32
  }
  func.func @transform_4(%arg0: i32) -> (i32, i32) {
    %c0_i32 = arith.constant 0 : i32
    %c0_i32_0 = arith.constant 0 : i32
    %c0_i32_1 = arith.constant 0 : i32
    return %c0_i32, %c0_i32_0 : i32, i32
  }
  func.func @transform_5(%arg0: i32) -> (i32, i32) {
    %c0_i32 = arith.constant 0 : i32
    %c0_i32_0 = arith.constant 0 : i32
    %c0_i32_1 = arith.constant 0 : i32
    return %c0_i32, %c0_i32_0 : i32, i32
  }
  func.func @transform_6(%arg0: i32) -> (i32, i32) {
    %c0_i32 = arith.constant 0 : i32
    %c0_i32_0 = arith.constant 0 : i32
    %c0_i32_1 = arith.constant 0 : i32
    return %c0_i32, %c0_i32_0 : i32, i32
  }
  func.func @transform_7(%arg0: i32) -> (i32, i32) {
    %c0_i32 = arith.constant 0 : i32
    %c0_i32_0 = arith.constant 0 : i32
    %c0_i32_1 = arith.constant 0 : i32
    return %c0_i32, %c0_i32_0 : i32, i32
  }
  func.func @transform_8(%arg0: i32) -> (i32, i32) {
    %c0_i32 = arith.constant 0 : i32
    %c0_i32_0 = arith.constant 0 : i32
    %c0_i32_1 = arith.constant 0 : i32
    return %c0_i32, %c0_i32_0 : i32, i32
  }
  func.func @transform_9(%arg0: i32) -> (i32, i32) {
    %c0_i32 = arith.constant 0 : i32
    %c0_i32_0 = arith.constant 0 : i32
    return %arg0, %c0_i32 : i32, i32
  }
}

module attributes {stable_mosaic.version = 11 : i64} {
  func.func @kernel(%arg0: i32, %arg1: memref<16x512xbf16, #tpu.memory_space<vmem>>, %arg2: memref<512x128xbf16, #tpu.memory_space<vmem>>, %arg3: memref<4x128xf32, #tpu.memory_space<vmem>>, %arg4: memref<512x256xbf16, #tpu.memory_space<vmem>>, %arg5: memref<1x256xf32, #tpu.memory_space<vmem>>, %arg6: memref<256x128xbf16, #tpu.memory_space<vmem>>, %arg7: memref<1x128xf32, #tpu.memory_space<vmem>>, %arg8: memref<128x128xbf16, #tpu.memory_space<vmem>>, %arg9: memref<1x128xf32, #tpu.memory_space<vmem>>, %arg10: memref<16x128xbf16, #tpu.memory_space<vmem>>) attributes {dimension_semantics = [#tpu.dimension_semantics<parallel>], iteration_bounds = array<i64: 1>, scalar_prefetch = 0 : i64, scratch_operands = 0 : i64, tpu.core_type = #tpu.core_type<tc>, window_params = [{transform_indices = @transform_0, window_bounds = array<i64: 16, 512>}, {pipeline_mode = #tpu.pipeline_mode<synchronous>, transform_indices = @transform_1, window_bounds = array<i64: 512, 128>}, {pipeline_mode = #tpu.pipeline_mode<synchronous>, transform_indices = @transform_2, window_bounds = array<i64: 4, 128>}, {pipeline_mode = #tpu.pipeline_mode<synchronous>, transform_indices = @transform_3, window_bounds = array<i64: 512, 256>}, {pipeline_mode = #tpu.pipeline_mode<synchronous>, transform_indices = @transform_4, window_bounds = array<i64: 1, 256>}, {pipeline_mode = #tpu.pipeline_mode<synchronous>, transform_indices = @transform_5, window_bounds = array<i64: 256, 128>}, {pipeline_mode = #tpu.pipeline_mode<synchronous>, transform_indices = @transform_6, window_bounds = array<i64: 1, 128>}, {pipeline_mode = #tpu.pipeline_mode<synchronous>, transform_indices = @transform_7, window_bounds = array<i64: 128, 128>}, {pipeline_mode = #tpu.pipeline_mode<synchronous>, transform_indices = @transform_8, window_bounds = array<i64: 1, 128>}, {transform_indices = @transform_9, window_bounds = array<i64: 16, 128>}]} {
    %c0 = arith.constant 0 : index
    %c0_0 = arith.constant 0 : index
    %0 = vector.load %arg1[%c0, %c0_0] : memref<16x512xbf16, #tpu.memory_space<vmem>>, vector<16x512xbf16>
    %c0_1 = arith.constant 0 : index
    %c0_2 = arith.constant 0 : index
    %1 = vector.load %arg3[%c0_1, %c0_2] : memref<4x128xf32, #tpu.memory_space<vmem>>, vector<4x128xf32>
    %2 = vector.extract_strided_slice %0 {offsets = [0, 0], sizes = [16, 128], strides = [1, 1]} : vector<16x512xbf16> to vector<16x128xbf16>
    %c0_3 = arith.constant 0 : index
    %c0_4 = arith.constant 0 : index
    %3 = vector.load %arg2[%c0_3, %c0_4] : memref<512x128xbf16, #tpu.memory_space<vmem>>, vector<128x128xbf16>
    %cst = arith.constant dense<0.000000e+00> : vector<16x128xf32>
    %4 = tpu.matmul %2, %3, %cst {dimension_numbers = #tpu.dot_dimension_numbers<[1], [0], [0], [1], [0, 0, 1, 1], [], []>} : vector<16x128xbf16>, vector<128x128xbf16>, vector<16x128xf32> -> vector<16x128xf32>
    %5 = vector.extract_strided_slice %1 {offsets = [0, 0], sizes = [1, 128], strides = [1, 1]} : vector<4x128xf32> to vector<1x128xf32>
    %6 = vector.broadcast %5 : vector<1x128xf32> to vector<16x128xf32>
    %7 = arith.addf %4, %6 : vector<16x128xf32>
    %cst_5 = arith.constant 0.000000e+00 : f32
    %8 = vector.broadcast %cst_5 : f32 to vector<16x128xf32>
    %9 = arith.maximumf %7, %8 : vector<16x128xf32>
    %10 = arith.truncf %9 : vector<16x128xf32> to vector<16x128xbf16>
    %c0_6 = arith.constant 0 : index
    %c0_7 = arith.constant 0 : index
    %11 = vector.load %arg4[%c0_6, %c0_7] : memref<512x256xbf16, #tpu.memory_space<vmem>>, vector<128x256xbf16>
    %cst_8 = arith.constant dense<0.000000e+00> : vector<16x256xf32>
    %12 = tpu.matmul %10, %11, %cst_8 {dimension_numbers = #tpu.dot_dimension_numbers<[1], [0], [0], [1], [0, 0, 1, 1], [], []>} : vector<16x128xbf16>, vector<128x256xbf16>, vector<16x256xf32> -> vector<16x256xf32>
    %13 = vector.extract_strided_slice %0 {offsets = [0, 128], sizes = [16, 128], strides = [1, 1]} : vector<16x512xbf16> to vector<16x128xbf16>
    %c128 = arith.constant 128 : index
    %c0_9 = arith.constant 0 : index
    %14 = vector.load %arg2[%c128, %c0_9] : memref<512x128xbf16, #tpu.memory_space<vmem>>, vector<128x128xbf16>
    %cst_10 = arith.constant dense<0.000000e+00> : vector<16x128xf32>
    %15 = tpu.matmul %13, %14, %cst_10 {dimension_numbers = #tpu.dot_dimension_numbers<[1], [0], [0], [1], [0, 0, 1, 1], [], []>} : vector<16x128xbf16>, vector<128x128xbf16>, vector<16x128xf32> -> vector<16x128xf32>
    %16 = vector.extract_strided_slice %1 {offsets = [1, 0], sizes = [1, 128], strides = [1, 1]} : vector<4x128xf32> to vector<1x128xf32>
    %17 = vector.broadcast %16 : vector<1x128xf32> to vector<16x128xf32>
    %18 = arith.addf %15, %17 : vector<16x128xf32>
    %cst_11 = arith.constant 0.000000e+00 : f32
    %19 = vector.broadcast %cst_11 : f32 to vector<16x128xf32>
    %20 = arith.maximumf %18, %19 : vector<16x128xf32>
    %21 = arith.truncf %20 : vector<16x128xf32> to vector<16x128xbf16>
    %c128_12 = arith.constant 128 : index
    %c0_13 = arith.constant 0 : index
    %22 = vector.load %arg4[%c128_12, %c0_13] : memref<512x256xbf16, #tpu.memory_space<vmem>>, vector<128x256xbf16>
    %cst_14 = arith.constant dense<0.000000e+00> : vector<16x256xf32>
    %23 = tpu.matmul %21, %22, %cst_14 {dimension_numbers = #tpu.dot_dimension_numbers<[1], [0], [0], [1], [0, 0, 1, 1], [], []>} : vector<16x128xbf16>, vector<128x256xbf16>, vector<16x256xf32> -> vector<16x256xf32>
    %24 = arith.addf %12, %23 : vector<16x256xf32>
    %25 = vector.extract_strided_slice %0 {offsets = [0, 256], sizes = [16, 128], strides = [1, 1]} : vector<16x512xbf16> to vector<16x128xbf16>
    %c256 = arith.constant 256 : index
    %c0_15 = arith.constant 0 : index
    %26 = vector.load %arg2[%c256, %c0_15] : memref<512x128xbf16, #tpu.memory_space<vmem>>, vector<128x128xbf16>
    %cst_16 = arith.constant dense<0.000000e+00> : vector<16x128xf32>
    %27 = tpu.matmul %25, %26, %cst_16 {dimension_numbers = #tpu.dot_dimension_numbers<[1], [0], [0], [1], [0, 0, 1, 1], [], []>} : vector<16x128xbf16>, vector<128x128xbf16>, vector<16x128xf32> -> vector<16x128xf32>
    %28 = vector.extract_strided_slice %1 {offsets = [2, 0], sizes = [1, 128], strides = [1, 1]} : vector<4x128xf32> to vector<1x128xf32>
    %29 = vector.broadcast %28 : vector<1x128xf32> to vector<16x128xf32>
    %30 = arith.addf %27, %29 : vector<16x128xf32>
    %cst_17 = arith.constant 0.000000e+00 : f32
    %31 = vector.broadcast %cst_17 : f32 to vector<16x128xf32>
    %32 = arith.maximumf %30, %31 : vector<16x128xf32>
    %33 = arith.truncf %32 : vector<16x128xf32> to vector<16x128xbf16>
    %c256_18 = arith.constant 256 : index
    %c0_19 = arith.constant 0 : index
    %34 = vector.load %arg4[%c256_18, %c0_19] : memref<512x256xbf16, #tpu.memory_space<vmem>>, vector<128x256xbf16>
    %cst_20 = arith.constant dense<0.000000e+00> : vector<16x256xf32>
    %35 = tpu.matmul %33, %34, %cst_20 {dimension_numbers = #tpu.dot_dimension_numbers<[1], [0], [0], [1], [0, 0, 1, 1], [], []>} : vector<16x128xbf16>, vector<128x256xbf16>, vector<16x256xf32> -> vector<16x256xf32>
    %36 = arith.addf %24, %35 : vector<16x256xf32>
    %37 = vector.extract_strided_slice %0 {offsets = [0, 384], sizes = [16, 128], strides = [1, 1]} : vector<16x512xbf16> to vector<16x128xbf16>
    %c384 = arith.constant 384 : index
    %c0_21 = arith.constant 0 : index
    %38 = vector.load %arg2[%c384, %c0_21] : memref<512x128xbf16, #tpu.memory_space<vmem>>, vector<128x128xbf16>
    %cst_22 = arith.constant dense<0.000000e+00> : vector<16x128xf32>
    %39 = tpu.matmul %37, %38, %cst_22 {dimension_numbers = #tpu.dot_dimension_numbers<[1], [0], [0], [1], [0, 0, 1, 1], [], []>} : vector<16x128xbf16>, vector<128x128xbf16>, vector<16x128xf32> -> vector<16x128xf32>
    %40 = vector.extract_strided_slice %1 {offsets = [3, 0], sizes = [1, 128], strides = [1, 1]} : vector<4x128xf32> to vector<1x128xf32>
    %41 = vector.broadcast %40 : vector<1x128xf32> to vector<16x128xf32>
    %42 = arith.addf %39, %41 : vector<16x128xf32>
    %cst_23 = arith.constant 0.000000e+00 : f32
    %43 = vector.broadcast %cst_23 : f32 to vector<16x128xf32>
    %44 = arith.maximumf %42, %43 : vector<16x128xf32>
    %45 = arith.truncf %44 : vector<16x128xf32> to vector<16x128xbf16>
    %c384_24 = arith.constant 384 : index
    %c0_25 = arith.constant 0 : index
    %46 = vector.load %arg4[%c384_24, %c0_25] : memref<512x256xbf16, #tpu.memory_space<vmem>>, vector<128x256xbf16>
    %cst_26 = arith.constant dense<0.000000e+00> : vector<16x256xf32>
    %47 = tpu.matmul %45, %46, %cst_26 {dimension_numbers = #tpu.dot_dimension_numbers<[1], [0], [0], [1], [0, 0, 1, 1], [], []>} : vector<16x128xbf16>, vector<128x256xbf16>, vector<16x256xf32> -> vector<16x256xf32>
    %48 = arith.addf %36, %47 : vector<16x256xf32>
    %c0_27 = arith.constant 0 : index
    %c0_28 = arith.constant 0 : index
    %49 = vector.load %arg5[%c0_27, %c0_28] : memref<1x256xf32, #tpu.memory_space<vmem>>, vector<1x256xf32>
    %50 = vector.broadcast %49 : vector<1x256xf32> to vector<16x256xf32>
    %51 = arith.addf %48, %50 : vector<16x256xf32>
    %cst_29 = arith.constant 0.000000e+00 : f32
    %52 = vector.broadcast %cst_29 : f32 to vector<16x256xf32>
    %53 = arith.maximumf %51, %52 : vector<16x256xf32>
    %54 = arith.truncf %53 : vector<16x256xf32> to vector<16x256xbf16>
    %c0_30 = arith.constant 0 : index
    %c0_31 = arith.constant 0 : index
    %55 = vector.load %arg6[%c0_30, %c0_31] : memref<256x128xbf16, #tpu.memory_space<vmem>>, vector<256x128xbf16>
    %cst_32 = arith.constant dense<0.000000e+00> : vector<16x128xf32>
    %56 = tpu.matmul %54, %55, %cst_32 {dimension_numbers = #tpu.dot_dimension_numbers<[1], [0], [0], [1], [0, 0, 1, 1], [], []>} : vector<16x256xbf16>, vector<256x128xbf16>, vector<16x128xf32> -> vector<16x128xf32>
    %c0_33 = arith.constant 0 : index
    %c0_34 = arith.constant 0 : index
    %57 = vector.load %arg7[%c0_33, %c0_34] : memref<1x128xf32, #tpu.memory_space<vmem>>, vector<1x128xf32>
    %58 = vector.broadcast %57 : vector<1x128xf32> to vector<16x128xf32>
    %59 = arith.addf %56, %58 : vector<16x128xf32>
    %cst_35 = arith.constant 0.000000e+00 : f32
    %60 = vector.broadcast %cst_35 : f32 to vector<16x128xf32>
    %61 = arith.maximumf %59, %60 : vector<16x128xf32>
    %62 = arith.truncf %61 : vector<16x128xf32> to vector<16x128xbf16>
    %c0_36 = arith.constant 0 : index
    %c0_37 = arith.constant 0 : index
    %63 = vector.load %arg8[%c0_36, %c0_37] : memref<128x128xbf16, #tpu.memory_space<vmem>>, vector<128x128xbf16>
    %cst_38 = arith.constant dense<0.000000e+00> : vector<16x128xf32>
    %64 = tpu.matmul %62, %63, %cst_38 {dimension_numbers = #tpu.dot_dimension_numbers<[1], [0], [0], [1], [0, 0, 1, 1], [], []>} : vector<16x128xbf16>, vector<128x128xbf16>, vector<16x128xf32> -> vector<16x128xf32>
    %c0_39 = arith.constant 0 : index
    %c0_40 = arith.constant 0 : index
    %65 = vector.load %arg9[%c0_39, %c0_40] : memref<1x128xf32, #tpu.memory_space<vmem>>, vector<1x128xf32>
    %66 = vector.broadcast %65 : vector<1x128xf32> to vector<16x128xf32>
    %67 = arith.addf %64, %66 : vector<16x128xf32>
    %68 = arith.truncf %67 : vector<16x128xf32> to vector<16x128xbf16>
    %c0_41 = arith.constant 0 : index
    %c0_42 = arith.constant 0 : index
    %69 = vector.load %arg10[%c0_41, %c0_42] : memref<16x128xbf16, #tpu.memory_space<vmem>>, vector<16x128xbf16>
    tpu.vector_store %arg10[%c0_41, %c0_42], %68 {strides = array<i32>} : memref<16x128xbf16, #tpu.memory_space<vmem>>, vector<16x128xbf16>,
    return
  }
  func.func @transform_0(%arg0: i32) -> (i32, i32) {
    %c0_i32 = arith.constant 0 : i32
    %c0_i32_0 = arith.constant 0 : i32
    return %arg0, %c0_i32 : i32, i32
  }
  func.func @transform_1(%arg0: i32) -> (i32, i32) {
    %c0_i32 = arith.constant 0 : i32
    %c0_i32_0 = arith.constant 0 : i32
    %c0_i32_1 = arith.constant 0 : i32
    return %c0_i32, %c0_i32_0 : i32, i32
  }
  func.func @transform_2(%arg0: i32) -> (i32, i32) {
    %c0_i32 = arith.constant 0 : i32
    %c0_i32_0 = arith.constant 0 : i32
    %c0_i32_1 = arith.constant 0 : i32
    return %c0_i32, %c0_i32_0 : i32, i32
  }
  func.func @transform_3(%arg0: i32) -> (i32, i32) {
    %c0_i32 = arith.constant 0 : i32
    %c0_i32_0 = arith.constant 0 : i32
    %c0_i32_1 = arith.constant 0 : i32
    return %c0_i32, %c0_i32_0 : i32, i32
  }
  func.func @transform_4(%arg0: i32) -> (i32, i32) {
    %c0_i32 = arith.constant 0 : i32
    %c0_i32_0 = arith.constant 0 : i32
    %c0_i32_1 = arith.constant 0 : i32
    return %c0_i32, %c0_i32_0 : i32, i32
  }
  func.func @transform_5(%arg0: i32) -> (i32, i32) {
    %c0_i32 = arith.constant 0 : i32
    %c0_i32_0 = arith.constant 0 : i32
    %c0_i32_1 = arith.constant 0 : i32
    return %c0_i32, %c0_i32_0 : i32, i32
  }
  func.func @transform_6(%arg0: i32) -> (i32, i32) {
    %c0_i32 = arith.constant 0 : i32
    %c0_i32_0 = arith.constant 0 : i32
    %c0_i32_1 = arith.constant 0 : i32
    return %c0_i32, %c0_i32_0 : i32, i32
  }
  func.func @transform_7(%arg0: i32) -> (i32, i32) {
    %c0_i32 = arith.constant 0 : i32
    %c0_i32_0 = arith.constant 0 : i32
    %c0_i32_1 = arith.constant 0 : i32
    return %c0_i32, %c0_i32_0 : i32, i32
  }
  func.func @transform_8(%arg0: i32) -> (i32, i32) {
    %c0_i32 = arith.constant 0 : i32
    %c0_i32_0 = arith.constant 0 : i32
    %c0_i32_1 = arith.constant 0 : i32
    return %c0_i32, %c0_i32_0 : i32, i32
  }
  func.func @transform_9(%arg0: i32) -> (i32, i32) {
    %c0_i32 = arith.constant 0 : i32
    %c0_i32_0 = arith.constant 0 : i32
    return %arg0, %c0_i32 : i32, i32
  }
}

</mosaic_0001>

<bundles_post_ra>
// kernel: tpu_custom_call.1
= control target key start
LH: loop header
LB: loop body
LE: loop exit
PB: predicated region body
PF: predicated region fallthrough
CT: control target
= control target key end

     0   :  { %14 = vsyncpa [#allocation3], 0  ;;  %s2343_s0 = inlined_call_operand.hbm [shape: bf16[16,512], index: 0, kind: input, shape index: {}]   ;;  %s2344_s1 = inlined_call_operand.hbm [shape: bf16[512,128], index: 1, kind: input, shape index: {}]   ;;  %s2345_s2 = inlined_call_operand.vmem [shape: f32[4,128], index: 2, kind: input, shape index: {}]   ;;  %s2346_s3 = inlined_call_operand.hbm [shape: bf16[512,256], index: 3, kind: input, shape index: {}]   ;;  %s2347_s4 = inlined_call_operand.vmem [shape: f32[1,256], index: 4, kind: input, shape index: {}]   ;;  %s2348_s5 = inlined_call_operand.hbm [shape: bf16[256,128], index: 5, kind: input, shape index: {}]   ;;  %s2349_s6 = inlined_call_operand.vmem [shape: f32[1,128], index: 6, kind: input, shape index: {}]   ;;  %s2350_s7 = inlined_call_operand.hbm [shape: bf16[128,128], index: 7, kind: input, shape index: {}]   ;;  %s2351_s8 = inlined_call_operand.vmem [shape: f32[1,128], index: 8, kind: input, shape index: {}]   ;;  %s2352_s9 = inlined_call_operand.hbm [shape: bf16[16,128], index: 9, kind: output, shape index: {}]  }
   0x1   :  { %15 = vsyncpa [#allocation6], 0 }
   0x2   :  { %16 = vsyncpa [#allocation9], 0 }
   0x3   :  { %17 = vsyncpa [#allocation4], 0  ;;  %s2108_s30 = smov [#allocation5]   ;;  %s1968_s13 = scalar_lea.hbm %s2344_s1, 4096 }
   0x4   :  { %s35_s10 = sshll.u32 %s2108_s30, 4  ;;  %p1969_p0 = scmp.ne.s32.totalorder %s2344_s1, %s1968_s13  ;;  %s36_s10 = int_to_ptr.vmem [resolvable:$true] %s35_s10 }
   0x5   :  { %p1972_p1 = scmp.lt.u32.totalorder %s1968_s13, %s2344_s1 }
   0x7   :  { %p1974_p2 = pnand %p1972_p1, %p1969_p0 }
   0x9   :  { %1977 = shalt.err (!%p1974_p2)
}
   0xa   :  { %s1978_s18 = scalar_lea.vmem %s36_s10, 4096  ;;  %p1983_p4 = scmp.lt.s32.totalorder %s36_s10, %s36_s10 }
   0xb   :  { %p1979_p3 = scmp.ne.s32.totalorder %s36_s10, %s1978_s18  ;;  %p1984_p5 = scmp.lt.s32.totalorder %s1978_s18, %s1978_s18 }
   0xd   :  { %p1985_p6 = por %p1984_p5, %p1983_p4 }
   0xf   :  { %p1986_p7 = pnand %p1985_p6, %p1979_p3 }
  0x11   :  { %1989 = shalt.err (!%p1986_p7)
}
  0x12   :  { %s2109_s19 = smov 64   ;;  %s2110_s20 = smov 4  }
  0x13   :  { %41 = dma.hbm_to_vmem [thread:$0]  %s2344_s1, 4096, %s36_s10, [#allocation6], %s2109_s19, %s2109_s19, %s2110_s20  }
  0x14   :  { %s2111_s23 = smov [#allocation8]   ;;  %s2112_s25 = smov [#allocation2]  }
  0x15   :  { %s63_s24 = sshll.u32 %s2111_s23, 4  ;;  %s23_s26 = sshll.u32 %s2112_s25, 4  ;;  %s64_s24 = int_to_ptr.vmem [resolvable:$true] %s63_s24  ;;  %s24_s26 = int_to_ptr.vmem [resolvable:$true] %s23_s26 }
  0x16   :  { %s1990_s29 = scalar_lea.hbm %s2348_s5, 2048 }
  0x17   :  { %p1991_p8 = scmp.ne.s32.totalorder %s2348_s5, %s1990_s29  ;;  %p1994_p9 = scmp.lt.u32.totalorder %s1990_s29, %s2348_s5 }
  0x19   :  { %p1996_p10 = pnand %p1994_p9, %p1991_p8 }
  0x1b   :  { %1999 = shalt.err (!%p1996_p10)
}
  0x1c   :  { %s2000_s1 = scalar_lea.vmem %s64_s24, 2048  ;;  %p2005_p12 = scmp.lt.s32.totalorder %s64_s24, %s64_s24 }
  0x1d   :  { %p2001_p11 = scmp.ne.s32.totalorder %s64_s24, %s2000_s1  ;;  %p2006_p13 = scmp.lt.s32.totalorder %s2000_s1, %s2000_s1 }
  0x1f   :  { %p2007_p0 = por %p2006_p13, %p2005_p12 }
  0x21   :  { %p2008_p1 = pnand %p2007_p0, %p2001_p11 }
  0x23   :  { %2011 = shalt.err (!%p2008_p1)
}
  0x24   :  { %69 = dma.hbm_to_vmem [thread:$0]  %s2348_s5, 2048, %s64_s24, [#allocation9], %s2109_s19, %s2109_s19, %s2110_s20  }
  0x25   :  { %s2012_s17 = scalar_lea.hbm %s2343_s0, 512 }
  0x26   :  { %p2013_p2 = scmp.ne.s32.totalorder %s2343_s0, %s2012_s17  ;;  %p2016_p3 = scmp.lt.u32.totalorder %s2012_s17, %s2343_s0 }
  0x28   :  { %p2018_p4 = pnand %p2016_p3, %p2013_p2 }
  0x2a   :  { %2021 = shalt.err (!%p2018_p4)
}
  0x2b   :  { %s2022_s25 = scalar_lea.vmem %s24_s26, 512  ;;  %p2027_p6 = scmp.lt.s32.totalorder %s24_s26, %s24_s26 }
  0x2c   :  { %p2023_p5 = scmp.ne.s32.totalorder %s24_s26, %s2022_s25  ;;  %p2028_p7 = scmp.lt.s32.totalorder %s2022_s25, %s2022_s25 }
  0x2e   :  { %p2029_p8 = por %p2028_p7, %p2027_p6 }
  0x30   :  { %p2030_p9 = pnand %p2029_p8, %p2023_p5 }
  0x32   :  { %2033 = shalt.err (!%p2030_p9)
}
  0x33   :  { %s2113_s5 = smov 256   ;;  %s2114_s24 = smov 16  }
  0x34   :  { %29 = dma.hbm_to_vmem [thread:$0]  %s2343_s0, 512, %s24_s26, [#allocation3], %s2113_s5, %s2113_s5, %s2114_s24  }
  0x35   :  { %s2115_s29 = smov [#allocation7]   ;;  %s2034_s13 = scalar_lea.hbm %s2346_s3, 8192 }
  0x36   :  { %s49_s30 = sshll.u32 %s2115_s29, 4  ;;  %p2035_p10 = scmp.ne.s32.totalorder %s2346_s3, %s2034_s13  ;;  %s50_s30 = int_to_ptr.vmem [resolvable:$true] %s49_s30 }
  0x37   :  { %p2038_p11 = scmp.lt.u32.totalorder %s2034_s13, %s2346_s3 }
  0x39   :  { %p2040_p12 = pnand %p2038_p11, %p2035_p10 }
  0x3b   :  { %2043 = shalt.err (!%p2040_p12)
}
  0x3c   :  { %s2044_s16 = scalar_lea.vmem %s50_s30, 8192  ;;  %p2049_p0 = scmp.lt.s32.totalorder %s50_s30, %s50_s30 }
  0x3d   :  { %p2045_p13 = scmp.ne.s32.totalorder %s50_s30, %s2044_s16  ;;  %p2050_p1 = scmp.lt.s32.totalorder %s2044_s16, %s2044_s16 }
  0x3f   :  { %p2051_p2 = por %p2050_p1, %p2049_p0 }
  0x41   :  { %p2052_p3 = pnand %p2051_p2, %p2045_p13 }
  0x43   :  { %2055 = shalt.err (!%p2052_p3)
}
  0x44   :  { %s2116_s0 = smov 128   ;;  %s2117_s26 = smov 8  }
  0x45   :  { %55 = dma.hbm_to_vmem [thread:$0]  %s2346_s3, 8192, %s50_s30, [#allocation6], %s2116_s0, %s2116_s0, %s2117_s26  }
  0x46   :  { %s2118_s21 = smov [#allocation10]   ;;  %s2056_s5 = scalar_lea.hbm %s2350_s7, 1024 }
  0x47   :  { %s77_s22 = sshll.u32 %s2118_s21, 4  ;;  %p2057_p4 = scmp.ne.s32.totalorder %s2350_s7, %s2056_s5  ;;  %s78_s22 = int_to_ptr.vmem [resolvable:$true] %s77_s22 }
  0x48   :  { %p2060_p5 = scmp.lt.u32.totalorder %s2056_s5, %s2350_s7 }
  0x4a   :  { %p2062_p6 = pnand %p2060_p5, %p2057_p4 }
  0x4c   :  { %2065 = shalt.err (!%p2062_p6)
}
  0x4d   :  { %s2066_s11 = scalar_lea.vmem %s78_s22, 1024  ;;  %p2071_p8 = scmp.lt.s32.totalorder %s78_s22, %s78_s22 }
  0x4e   :  { %p2067_p7 = scmp.ne.s32.totalorder %s78_s22, %s2066_s11  ;;  %p2072_p9 = scmp.lt.s32.totalorder %s2066_s11, %s2066_s11 }
  0x50   :  { %p2073_p10 = por %p2072_p9, %p2071_p8 }
  0x52   :  { %p2074_p11 = pnand %p2073_p10, %p2067_p7 }
  0x54   :  { %2077 = shalt.err (!%p2074_p11)
}
  0x55   :  { %83 = dma.hbm_to_vmem [thread:$0]  %s2350_s7, 1024, %s78_s22, [#allocation9], %s2109_s19, %s2109_s19, %s2110_s20  }
  0x56   :  { %2100 = dma.done.wait [#allocation3], 512  }
  0x57   :  { %2101 = vsyncadd [#allocation3], 4294966784 }
  0x58   :  { %2102 = dma.done.wait [#allocation6], 12288  }
  0x59   :  { %2103 = vsyncadd [#allocation6], 4294955008 }
  0x5a   :  { %2104 = dma.done.wait [#allocation9], 3072  }
  0x5b   :  { %2105 = vsyncadd [#allocation9], 4294964224  ;;  %v2119_v0 = vmov 0.0   ;;  %vm2120_vm0 = vmmov 0   ;;  %v1810_v1 = vld [vmem:[#allocation5 + $0x40] sm:$0xff]   ;;  %v1811_v2 = vld [vmem:[#allocation5 + $0x48] sm:$0xff]   ;;  %v123_v61 = vlaneseq }
  0x5c   :  { %1703 = vmatprep.subr.bf16.mxu1 %v2119_v0  ;;  %1683 = vmatprep.subr.bf16.mxu0 %v2119_v0  ;;  %v1812_v3 = vld [vmem:[#allocation5 + $0x50] sm:$0xff]   ;;  %v1818_v4 = vld [vmem:[#allocation5] sm:$0xff]   ;;  %v1813_v5 = vld [vmem:[#allocation5 + $0x58] sm:$0xff]   ;;  %v2121_v54 = vmov 0   ;;  %s2122_s15 = smov [#allocation11]  }
  0x5d   :  { %1719 = vmatprep.mubr.msk.bf16.mxu1 %vm2120_vm0, %v2119_v0  ;;  %1699 = vmatprep.mubr.msk.bf16.mxu0 %vm2120_vm0, %v2119_v0  ;;  %v1821_v6 = vld [vmem:[#allocation5 + $0x8] sm:$0xff]   ;;  %v1814_v7 = vld [vmem:[#allocation5 + $0x60] sm:$0xff]   ;;  %v1822_v8 = vld [vmem:[#allocation5 + $0x10] sm:$0xff]  }
  0x5e   :  { %1704 = vmatpush3.bf16.msra.mxu1 %v1810_v1  ;;  %1684 = vmatpush3.bf16.msra.mxu0 %v1818_v4  ;;  %v1815_v9 = vld [vmem:[#allocation5 + $0x68] sm:$0xff]   ;;  %v1823_v10 = vld [vmem:[#allocation5 + $0x18] sm:$0xff]   ;;  %v1816_v11 = vld [vmem:[#allocation5 + $0x70] sm:$0xff]   ;;  %v2283_v1 = vshrl.u32 %v123_v61, 7 }
  0x5f   :  { %1705 = vmatprep.subr.bf16.mxu1 %v2119_v0  ;;  %1685 = vmatprep.subr.bf16.mxu0 %v2119_v0  ;;  %v1824_v12 = vld [vmem:[#allocation5 + $0x20] sm:$0xff]   ;;  %v1817_v13 = vld [vmem:[#allocation5 + $0x78] sm:$0xff]   ;;  %v1825_v14 = vld [vmem:[#allocation5 + $0x28] sm:$0xff]  }
  0x60   :  { %v1819_v15 = vld [vmem:[#allocation2 + $0x4] ss:$16 sps:$4 sm:$0xff]   ;;  %v1827_v18 = vld [vmem:[#allocation5 + $0x38] sm:$0xff]   ;;  %v1830_v19 = vld [vmem:[#allocation5 + $0x88] sm:$0xff]   ;;  %v259_v4 = vsub.s32 1, %v2283_v1 }
  0x61   :  { %v1826_v16 = vld [vmem:[#allocation5 + $0x30] sm:$0xff]   ;;  %v1829_v17 = vld [vmem:[#allocation5 + $0x80] sm:$0xff]   ;;  %v1832_v25 = vld [vmem:[#allocation5 + $0x98] sm:$0xff]  }
  0x62   :  { %1706 = vmatpush3.bf16.msra.mxu1 %v1811_v2  ;;  %1686 = vmatpush3.bf16.msra.mxu0 %v1821_v6  ;;  %v1850_v20 = vld [vmem:[#allocation7 + $0x84] ss:$8 sps:$4 sm:$0xff]   ;;  %v1828_v21 = vld [vmem:[#allocation2] ss:$16 sps:$4 sm:$0xff]   ;;  %v1853_v24 = vld [vmem:[#allocation7 + $0x94] ss:$8 sps:$4 sm:$0xff]  }
  0x63   :  { %1707 = vmatprep.subr.bf16.mxu1 %v2119_v0  ;;  %1687 = vmatprep.subr.bf16.mxu0 %v2119_v0  ;;  %v1831_v22 = vld [vmem:[#allocation5 + $0x90] sm:$0xff]   ;;  %v1848_v23 = vld [vmem:[#allocation7 + $0x80] ss:$8 sps:$4 sm:$0xff]   ;;  %v1856_v27 = vld [vmem:[#allocation7 + $0xa4] ss:$8 sps:$4 sm:$0xff]  }
  0x64   :  { %v1851_v26 = vld [vmem:[#allocation7 + $0x90] ss:$8 sps:$4 sm:$0xff]   ;;  %v1833_v28 = vld [vmem:[#allocation5 + $0xa0] sm:$0xff]   ;;  %v1859_v30 = vld [vmem:[#allocation7 + $0xb4] ss:$8 sps:$4 sm:$0xff]  }
  0x65   :  { %v1854_v29 = vld [vmem:[#allocation7 + $0xa0] ss:$8 sps:$4 sm:$0xff]   ;;  %v1857_v32 = vld [vmem:[#allocation7 + $0xb0] ss:$8 sps:$4 sm:$0xff]   ;;  %v1862_v33 = vld [vmem:[#allocation7 + $0xc4] ss:$8 sps:$4 sm:$0xff]  }
  0x66   :  { %1708 = vmatpush3.bf16.msra.mxu1 %v1812_v3  ;;  %1688 = vmatpush3.bf16.msra.mxu0 %v1822_v8  ;;  %v1834_v31 = vld [vmem:[#allocation5 + $0xa8] sm:$0xff]   ;;  %v1835_v34 = vld [vmem:[#allocation5 + $0xb0] sm:$0xff]   ;;  %v1836_v37 = vld [vmem:[#allocation5 + $0xb8] sm:$0xff]  }
  0x67   :  { %1709 = vmatprep.subr.bf16.mxu1 %v2119_v0  ;;  %1689 = vmatprep.subr.bf16.mxu0 %v2119_v0  ;;  %v1860_v35 = vld [vmem:[#allocation7 + $0xc0] ss:$8 sps:$4 sm:$0xff]   ;;  %v1865_v36 = vld [vmem:[#allocation7 + $0xd4] ss:$8 sps:$4 sm:$0xff]   ;;  %v1863_v38 = vld [vmem:[#allocation7 + $0xd0] ss:$8 sps:$4 sm:$0xff]  }
  0x68   :  { %v1837_v39 = vld [vmem:[#allocation2 + $0x8] ss:$16 sps:$4 sm:$0xff]   ;;  %v1839_v40 = vld [vmem:[#allocation5 + $0xc0] sm:$0xff]   ;;  %v1841_v42 = vld [vmem:[#allocation5 + $0xd0] sm:$0xff]  }
  0x69   :  { %v1840_v41 = vld [vmem:[#allocation5 + $0xc8] sm:$0xff]   ;;  %v1842_v43 = vld [vmem:[#allocation5 + $0xd8] sm:$0xff]   ;;  %v1843_v44 = vld [vmem:[#allocation5 + $0xe0] sm:$0xff]  }
  0x6a   :  { %1710 = vmatpush3.bf16.msra.mxu1 %v1813_v5  ;;  %1690 = vmatpush3.bf16.msra.mxu0 %v1823_v10  ;;  %v1844_v45 = vld [vmem:[#allocation5 + $0xe8] sm:$0xff]   ;;  %v1845_v46 = vld [vmem:[#allocation5 + $0xf0] sm:$0xff]   ;;  %v1846_v47 = vld [vmem:[#allocation5 + $0xf8] sm:$0xff]  }
  0x6b   :  { %1711 = vmatprep.subr.bf16.mxu1 %v2119_v0  ;;  %1691 = vmatprep.subr.bf16.mxu0 %v2119_v0  ;;  %v1847_v48 = vld [vmem:[#allocation2 + $0xc] ss:$16 sps:$4 sm:$0xff]   ;;  %v1866_v50 = vld [vmem:[#allocation7 + $0xe0] ss:$8 sps:$4 sm:$0xff]   ;;  %v1869_v52 = vld [vmem:[#allocation7 + $0xf0] ss:$8 sps:$4 sm:$0xff]  }
  0x6c   :  { %v1868_v49 = vld [vmem:[#allocation7 + $0xe4] ss:$8 sps:$4 sm:$0xff]   ;;  %v1871_v51 = vld [vmem:[#allocation7 + $0xf4] ss:$8 sps:$4 sm:$0xff]   ;;  %v2289_v6 = vld [vmem:[%s2345_s2] sm:$0xf] }
  0x6d   :  { %v1874_v53 = vld [vmem:[#allocation7 + $0x4] ss:$8 sps:$4 sm:$0xff]   ;;  %v1948_v59 = vld [vmem:[#allocation8 + $0x50] sm:$0xff]   ;;  %v1950_v62 = vld [vmem:[#allocation8 + $0x58] sm:$0xff]  }
  0x6e   :  { %1712 = vmatpush3.bf16.msra.mxu1 %v1814_v7  ;;  %1692 = vmatpush3.bf16.msra.mxu0 %v1824_v12  ;;  %v1944_v55 = vld [vmem:[#allocation8 + $0x40] sm:$0xff]   ;;  %v1946_v57 = vld [vmem:[#allocation8 + $0x48] sm:$0xff]   ;;  %v1949_v60 = vld [vmem:[#allocation8 + $0x10] sm:$0xff]   ;;  %v260_v7 = vrot.slane %v2289_v6, %v259_v4 }
  0x6f   :  { %1713 = vmatprep.subr.bf16.mxu1 %v2119_v0  ;;  %1693 = vmatprep.subr.bf16.mxu0 %v2119_v0  ;;  %v1945_v56 = vld [vmem:[#allocation8] sm:$0xff]   ;;  %v1947_v58 = vld [vmem:[#allocation8 + $0x8] sm:$0xff]   ;;  %v1951_v63 = vld [vmem:[#allocation8 + $0x18] sm:$0xff]  }
  0x70   :  { %v1952_v2 = vld [vmem:[#allocation8 + $0x60] sm:$0xff]   ;;  %v1954_v5 = vld [vmem:[#allocation8 + $0x68] sm:$0xff]   ;;  %v1907_v61 = vld [vmem:[#allocation7 + $0x134] ss:$8 sps:$4 sm:$0xff]  }
  0x71   :  { %v1953_v3 = vld [vmem:[#allocation8 + $0x20] sm:$0xff]  }
  0x72   :  { %1714 = vmatpush3.bf16.msra.mxu1 %v1815_v9  ;;  %1694 = vmatpush3.bf16.msra.mxu0 %v1825_v14 }
  0x73   :  { %1715 = vmatprep.subr.bf16.mxu1 %v2119_v0  ;;  %1695 = vmatprep.subr.bf16.mxu0 %v2119_v0 }
  0x76   :  { %1716 = vmatpush3.bf16.msra.mxu1 %v1816_v11  ;;  %1696 = vmatpush3.bf16.msra.mxu0 %v1826_v16  ;;  %v125_v11 = vsub.s32 0, %v2283_v1 }
  0x77   :  { %1717 = vmatprep.subr.bf16.mxu1 %v2119_v0  ;;  %1697 = vmatprep.subr.bf16.mxu0 %v2119_v0 }
  0x7a   :  { %1718 = vmatpush3.bf16.msra.mxu1 %v1817_v13  ;;  %1698 = vmatpush3.bf16.msra.mxu0 %v1827_v18  ;;  %v1872_v18 = vld [vmem:[#allocation7] ss:$8 sps:$4 sm:$0xff]  }
  0x7b   :  { %1723 = vmatprep.subr.bf16.mxu1 %v2119_v0  ;;  %453 = vmatprep.subr.bf16.mxu0 %v1850_v20  ;;  %v1877_v20 = vld [vmem:[#allocation7 + $0x14] ss:$8 sps:$4 sm:$0xff]  }
  0x7d   :  { %1720 = vmatmul.mubr.bf16.vlgmr.msra.gmra.mrb[0].mxu1 %v1819_v15  ;;  %1700 = vmatmul.mubr.bf16.vlgmr.msra.gmra.mrb[0].mxu0 %v1828_v21 }
  0x7e   :  { %1724 = vmatpush3.bf16.msra.mxu1 %v1829_v17  ;;  %1739 = vmatprep.mubr.msk.bf16.mxu1 %vm2120_vm0, %v2119_v0  ;;  %v126_v17 = vrot.slane %v2289_v6, %v125_v11 }
  0x7f   :  { %1725 = vmatprep.subr.bf16.mxu1 %v2119_v0  ;;  %454 = vmatpush1.bf16.msra.mxu0 %v1848_v23 }
  0x80   :  { %455 = vmatprep.subr.bf16.mxu0 %v1853_v24  ;;  %485 = vmatprep.mubr.bf16.mxu0 %v2121_v54  ;;  %v1875_v24 = vld [vmem:[#allocation7 + $0x10] ss:$8 sps:$4 sm:$0xff]  }
  0x82   :  { %1726 = vmatpush3.bf16.msra.mxu1 %v1830_v19 }
  0x83   :  { %1727 = vmatprep.subr.bf16.mxu1 %v2119_v0  ;;  %456 = vmatpush1.bf16.msra.mxu0 %v1851_v26  ;;  %v1880_v26 = vld [vmem:[#allocation7 + $0x24] ss:$8 sps:$4 sm:$0xff]  }
  0x84   :  { %457 = vmatprep.subr.bf16.mxu0 %v1856_v27 }
  0x86   :  { %1728 = vmatpush3.bf16.msra.mxu1 %v1831_v22 }
  0x87   :  { %1729 = vmatprep.subr.bf16.mxu1 %v2119_v0  ;;  %458 = vmatpush1.bf16.msra.mxu0 %v1854_v29 }
  0x88   :  { %459 = vmatprep.subr.bf16.mxu0 %v1859_v30 }
  0x8a   :  { %1730 = vmatpush3.bf16.msra.mxu1 %v1832_v25 }
  0x8b   :  { %1731 = vmatprep.subr.bf16.mxu1 %v2119_v0  ;;  %460 = vmatpush1.bf16.msra.mxu0 %v1857_v32  ;;  %v1883_v32 = vld [vmem:[#allocation7 + $0x34] ss:$8 sps:$4 sm:$0xff]  }
  0x8c   :  { %461 = vmatprep.subr.bf16.mxu0 %v1862_v33 }
  0x8e   :  { %1732 = vmatpush3.bf16.msra.mxu1 %v1833_v28 }
  0x8f   :  { %1733 = vmatprep.subr.bf16.mxu1 %v2119_v0  ;;  %462 = vmatpush1.bf16.msra.mxu0 %v1860_v35  ;;  %v1886_v35 = vld [vmem:[#allocation7 + $0x44] ss:$8 sps:$4 sm:$0xff]  }
  0x90   :  { %463 = vmatprep.subr.bf16.mxu0 %v1865_v36  ;;  %v1884_v36 = vld [vmem:[#allocation7 + $0x40] ss:$8 sps:$4 sm:$0xff]  }
  0x92   :  { %1734 = vmatpush3.bf16.msra.mxu1 %v1834_v31  ;;  %v1878_v31 = vld [vmem:[#allocation7 + $0x20] ss:$8 sps:$4 sm:$0xff]  }
  0x93   :  { %1735 = vmatprep.subr.bf16.mxu1 %v2119_v0  ;;  %464 = vmatpush1.bf16.msra.mxu0 %v1863_v38  ;;  %v637_v38 = vsub.s32 2, %v2283_v1 }
  0x94   :  { %465 = vmatprep.subr.bf16.mxu0 %v1868_v49  ;;  %v1898_v49 = vld [vmem:[#allocation7 + $0x104] ss:$8 sps:$4 sm:$0xff]  }
  0x96   :  { %1736 = vmatpush3.bf16.msra.mxu1 %v1835_v34  ;;  %v1881_v34 = vld [vmem:[#allocation7 + $0x30] ss:$8 sps:$4 sm:$0xff]  }
  0x97   :  { %1737 = vmatprep.subr.bf16.mxu1 %v2119_v0  ;;  %466 = vmatpush1.bf16.msra.mxu0 %v1866_v50 }
  0x98   :  { %467 = vmatprep.subr.bf16.mxu0 %v1871_v51 }
  0x9a   :  { %1738 = vmatpush3.bf16.msra.mxu1 %v1836_v37  ;;  %v1889_v37 = vld [vmem:[#allocation7 + $0x54] ss:$8 sps:$4 sm:$0xff]  }
  0x9b   :  { %1743 = vmatprep.subr.bf16.mxu1 %v2119_v0  ;;  %468 = vmatpush1.bf16.msra.mxu0 %v1869_v52 }
  0x9c   :  { %576 = vmatprep.subr.bf16.mxu0 %v1874_v53 }
  0x9d   :  { %1740 = vmatmul.mubr.bf16.vlgmr.msra.gmra.mrb[4].mxu1 %v1837_v39  ;;  %v1887_v39 = vld [vmem:[#allocation7 + $0x50] ss:$8 sps:$4 sm:$0xff]  }
  0x9e   :  { %1744 = vmatpush3.bf16.msra.mxu1 %v1839_v40  ;;  %1759 = vmatprep.mubr.msk.bf16.mxu1 %vm2120_vm0, %v2119_v0  ;;  %v1892_v40 = vld [vmem:[#allocation7 + $0x64] ss:$8 sps:$4 sm:$0xff]  }
  0x9f   :  { %1745 = vmatprep.subr.bf16.mxu1 %v2119_v0 }
  0xa2   :  { %1746 = vmatpush3.bf16.msra.mxu1 %v1840_v41  ;;  %v638_v41 = vrot.slane %v2289_v6, %v637_v38  ;;  %v1956_v38 = vld [vmem:[#allocation8 + $0x70] sm:$0xff]  }
  0xa3   :  { %1747 = vmatprep.subr.bf16.mxu1 %v2119_v0 }
  0xa6   :  { %1748 = vmatpush3.bf16.msra.mxu1 %v1841_v42  ;;  %v1890_v42 = vld [vmem:[#allocation7 + $0x60] ss:$8 sps:$4 sm:$0xff]  }
  0xa7   :  { %1749 = vmatprep.subr.bf16.mxu1 %v2119_v0 }
  0xaa   :  { %1750 = vmatpush3.bf16.msra.mxu1 %v1842_v43  ;;  %v1895_v43 = vld [vmem:[#allocation7 + $0x74] ss:$8 sps:$4 sm:$0xff]  }
  0xab   :  { %1751 = vmatprep.subr.bf16.mxu1 %v2119_v0 }
  0xae   :  { %1752 = vmatpush3.bf16.msra.mxu1 %v1843_v44 }
  0xaf   :  { %1753 = vmatprep.subr.bf16.mxu1 %v2119_v0 }
  0xb2   :  { %1754 = vmatpush3.bf16.msra.mxu1 %v1844_v45 }
  0xb3   :  { %1755 = vmatprep.subr.bf16.mxu1 %v2119_v0 }
  0xb6   :  { %1756 = vmatpush3.bf16.msra.mxu1 %v1845_v46 }
  0xb7   :  { %1757 = vmatprep.subr.bf16.mxu1 %v2119_v0 }
  0xba   :  { %1758 = vmatpush3.bf16.msra.mxu1 %v1846_v47  ;;  %v1893_v47 = vld [vmem:[#allocation7 + $0x70] ss:$8 sps:$4 sm:$0xff]  }
  0xbb   :  { %1652 = vmatprep.subr.bf16.mxu1 %v1944_v55  ;;  %v1896_v55 = vld [vmem:[#allocation7 + $0x100] ss:$8 sps:$4 sm:$0xff]  }
  0xbd   :  { %1760 = vmatmul.mubr.bf16.vlgmr.msra.gmra.mrb[8].mxu1 %v1847_v48 }
  0xbe   :  { %1653 = vmatpush3.bf16.msra.mxu1 %v1945_v56  ;;  %v1901_v56 = vld [vmem:[#allocation7 + $0x114] ss:$8 sps:$4 sm:$0xff]  }
  0xbf   :  { %1654 = vmatprep.subr.bf16.mxu1 %v1946_v57 }
  0xc2   :  { %1655 = vmatpush3.bf16.msra.mxu1 %v1947_v58  ;;  %v1899_v58 = vld [vmem:[#allocation7 + $0x110] ss:$8 sps:$4 sm:$0xff]  }
  0xc3   :  { %1656 = vmatprep.subr.bf16.mxu1 %v1948_v59  ;;  %v1904_v59 = vld [vmem:[#allocation7 + $0x124] ss:$8 sps:$4 sm:$0xff]  }
  0xc6   :  { %1657 = vmatpush3.bf16.msra.mxu1 %v1949_v60  ;;  %v1902_v60 = vld [vmem:[#allocation7 + $0x120] ss:$8 sps:$4 sm:$0xff]  }
  0xc7   :  { %1658 = vmatprep.subr.bf16.mxu1 %v1950_v62  ;;  %v1905_v62 = vld [vmem:[#allocation7 + $0x130] ss:$8 sps:$4 sm:$0xff]  }
  0xca   :  { %1659 = vmatpush3.bf16.msra.mxu1 %v1951_v63  ;;  %v1910_v63 = vld [vmem:[#allocation7 + $0x144] ss:$8 sps:$4 sm:$0xff]  }
  0xcb   :  { %1660 = vmatprep.subr.bf16.mxu1 %v1952_v2  ;;  %v1908_v2 = vld [vmem:[#allocation7 + $0x140] ss:$8 sps:$4 sm:$0xff]  }
  0xce   :  { %1661 = vmatpush3.bf16.msra.mxu1 %v1953_v3  ;;  %v1913_v3 = vld [vmem:[#allocation7 + $0x154] ss:$8 sps:$4 sm:$0xff]  }
  0xcf   :  { %1662 = vmatprep.subr.bf16.mxu1 %v1954_v5  ;;  %v898_v5 = vsub.s32 3, %v2283_v1  ;;  %v1961_v1 = vld [vmem:[#allocation10 + $0x8] sm:$0xff]  }
 0x150   :  { %v347_v8 = vpop.f32.mrb[0].mxu1  ;;  %v215_v21 = vpop.f32.mrb[0].mxu0 }
 0x151   :  { %v348_v9 = vadd.f32 %v347_v8, %v260_v7  ;;  %v1721_v10 = vpop.f32.mrb[1].mxu1  ;;  %v216_v22 = vadd.f32 %v215_v21, %v126_v17  ;;  %v1701_v23 = vpop.f32.mrb[1].mxu0  ;;  %v1916_v8 = vld [vmem:[#allocation7 + $0x164] ss:$8 sps:$4 sm:$0xff]  }
 0x152   :  { %v350_v12 = vpop.f32.mrb[2].mxu1  ;;  %v218_v25 = vpop.f32.mrb[2].mxu0  ;;  %v1914_v10 = vld [vmem:[#allocation7 + $0x160] ss:$8 sps:$4 sm:$0xff]  }
 0x153   :  { %v351_v13 = vadd.f32 %v350_v12, %v260_v7  ;;  %v1722_v14 = vpop.f32.mrb[3].mxu1  ;;  %v354_v15 = vmax.f32 %v348_v9, 0.0  ;;  %v222_v27 = vmax.f32 %v216_v22, 0.0  ;;  %v219_v28 = vadd.f32 %v218_v25, %v126_v17  ;;  %v1702_v29 = vpop.f32.mrb[3].mxu0  ;;  %v1911_v7 = vld [vmem:[#allocation7 + $0x150] ss:$8 sps:$4 sm:$0xff]  }
 0x154   :  { %v899_v9 = vrot.slane %v2289_v6, %v898_v5  ;;  %v1919_v12 = vld [vmem:[#allocation7 + $0x174] ss:$8 sps:$4 sm:$0xff]   ;;  %v1920_v23 = vld [vmem:[#allocation7 + $0x180] ss:$8 sps:$4 sm:$0xff]   ;;  %v1923_v25 = vld [vmem:[#allocation7 + $0x190] ss:$8 sps:$4 sm:$0xff]  }
 0x155   :  { %v355_v16 = vmax.f32 %v351_v13, 0.0  ;;  %v223_v30 = vmax.f32 %v219_v28, 0.0  ;;  %v1925_v6 = vld [vmem:[#allocation7 + $0x194] ss:$8 sps:$4 sm:$0xff]   ;;  %v1929_v29 = vld [vmem:[#allocation7 + $0x1b0] ss:$8 sps:$4 sm:$0xff]  }
 0x156   :  { %v1931_v28 = vld [vmem:[#allocation7 + $0x1b4] ss:$8 sps:$4 sm:$0xff]   ;;  %v1581_v5 = vld [vmem:[%s2349_s6] ss:$0 sm:$0xff]  ;;  %s1467_s6 = sshll.u32 %s2122_s15, 4  ;;  %s1468_s6 = int_to_ptr.vmem [resolvable:$true] %s1467_s6 }
 0x157   :  { %v356_v19 = vpack.c.bf16 %v355_v16, %v354_v15  ;;  %v224_v33 = vpack.c.bf16 %v223_v30, %v222_v27  ;;  %v1917_v16 = vld [vmem:[#allocation7 + $0x170] ss:$8 sps:$4 sm:$0xff]   ;;  %v1926_v27 = vld [vmem:[#allocation7 + $0x1a0] ss:$8 sps:$4 sm:$0xff]   ;;  %v1934_v30 = vld [vmem:[#allocation7 + $0x1c4] ss:$8 sps:$4 sm:$0xff]   ;;  %p2083_p13 = scmp.lt.s32.totalorder %s1468_s6, %s1468_s6 }
 0x158   :  { %s2078_s16 = scalar_lea.vmem %s1468_s6, 128 }
 0x159   :  { %486 = vmatmul.mubr.bf16.vlgmr.msra.gmra.mrb[4].mxu0 %v356_v19  ;;  %p2079_p12 = scmp.ne.s32.totalorder %s1468_s6, %s2078_s16  ;;  %p2084_p0 = scmp.lt.s32.totalorder %s2078_s16, %s2078_s16 }
 0x15a   :  { %577 = vmatpush1.bf16.msra.mxu0 %v1872_v18  ;;  %608 = vmatprep.mubr.bf16.mxu0 %v2121_v54  ;;  %v1922_v18 = vld [vmem:[#allocation7 + $0x184] ss:$8 sps:$4 sm:$0xff]  }
 0x15b   :  { %578 = vmatprep.subr.bf16.mxu0 %v1877_v20  ;;  %p2085_p1 = por %p2084_p0, %p2083_p13 }
 0x15d   :  { %p2086_p2 = pnand %p2085_p1, %p2079_p12 }
 0x15e   :  { %579 = vmatpush1.bf16.msra.mxu0 %v1875_v24 }
 0x15f   :  { %580 = vmatprep.subr.bf16.mxu0 %v1880_v26  ;;  %v1928_v26 = vld [vmem:[#allocation7 + $0x1a4] ss:$8 sps:$4 sm:$0xff]  }
 0x162   :  { %581 = vmatpush1.bf16.msra.mxu0 %v1878_v31  ;;  %v1932_v31 = vld [vmem:[#allocation7 + $0x1c0] ss:$8 sps:$4 sm:$0xff]  }
 0x163   :  { %582 = vmatprep.subr.bf16.mxu0 %v1883_v32  ;;  %v1937_v32 = vld [vmem:[#allocation7 + $0x1d4] ss:$8 sps:$4 sm:$0xff]  }
 0x166   :  { %583 = vmatpush1.bf16.msra.mxu0 %v1881_v34  ;;  %v1940_v34 = vld [vmem:[#allocation7 + $0x1e4] ss:$8 sps:$4 sm:$0xff]  }
 0x167   :  { %584 = vmatprep.subr.bf16.mxu0 %v1886_v35  ;;  %v1943_v35 = vld [vmem:[#allocation7 + $0x1f4] ss:$8 sps:$4 sm:$0xff]  }
 0x16a   :  { %585 = vmatpush1.bf16.msra.mxu0 %v1884_v36  ;;  %v1941_v36 = vld [vmem:[#allocation7 + $0x1f0] ss:$8 sps:$4 sm:$0xff]  }
 0x16b   :  { %586 = vmatprep.subr.bf16.mxu0 %v1889_v37  ;;  %v1955_v37 = vld [vmem:[#allocation8 + $0x28] sm:$0xff]  }
 0x16c   :  { %1663 = vmatpush3.bf16.msra.mxu1 %v1955_v37 }
 0x16d   :  { %1664 = vmatprep.subr.bf16.mxu1 %v1956_v38 }
 0x16e   :  { %587 = vmatpush1.bf16.msra.mxu0 %v1887_v39  ;;  %v1957_v39 = vld [vmem:[#allocation8 + $0x30] sm:$0xff]  }
 0x16f   :  { %588 = vmatprep.subr.bf16.mxu0 %v1892_v40  ;;  %v1958_v40 = vld [vmem:[#allocation8 + $0x78] sm:$0xff]  }
 0x170   :  { %v727_v44 = vpop.f32.mrb[4].mxu1  ;;  %1665 = vmatpush3.bf16.msra.mxu1 %v1957_v39 }
 0x171   :  { %v728_v45 = vadd.f32 %v727_v44, %v638_v41  ;;  %v1741_v46 = vpop.f32.mrb[5].mxu1  ;;  %1666 = vmatprep.subr.bf16.mxu1 %v1958_v40 }
 0x172   :  { %589 = vmatpush1.bf16.msra.mxu0 %v1890_v42  ;;  %v730_v48 = vpop.f32.mrb[6].mxu1  ;;  %v1139_v42 = vld [vmem:[%s2347_s4] sm:$0x3] }
 0x173   :  { %590 = vmatprep.subr.bf16.mxu0 %v1895_v43  ;;  %v734_v50 = vmax.f32 %v728_v45, 0.0  ;;  %v731_v51 = vadd.f32 %v730_v48, %v638_v41  ;;  %v1742_v52 = vpop.f32.mrb[7].mxu1  ;;  %v1959_v41 = vld [vmem:[#allocation8 + $0x38] sm:$0xff]   ;;  %v1144_v43 = vrot.slane %v1139_v42, %v125_v11  ;;  %v1148_v44 = vrot.slane %v1139_v42, %v259_v4  ;;  %v1962_v4 = vld [vmem:[#allocation10 + $0x10] sm:$0xff]  }
 0x174   :  { %1667 = vmatpush3.bf16.msra.mxu1 %v1959_v41  ;;  %v1963_v11 = vld [vmem:[#allocation10 + $0x18] sm:$0xff]  }
 0x175   :  { %v735_v53 = vmax.f32 %v731_v51, 0.0  ;;  %1763 = vmatprep.subr.bf16.mxu1 %v2119_v0 }
 0x176   :  { %591 = vmatpush1.bf16.msra.mxu0 %v1893_v47 }
 0x177   :  { %833 = vmatprep.subr.bf16.mxu0 %v1898_v49  ;;  %v736_v57 = vpack.c.bf16 %v735_v53, %v734_v50 }
 0x179   :  { %609 = vmatmul.mubr.bf16.vlgmr.msra.gmra.mrb[4].mxu0 %v224_v33  ;;  %v1935_v33 = vld [vmem:[#allocation7 + $0x1d0] ss:$8 sps:$4 sm:$0xff]  }
 0x17a   :  { %834 = vmatpush1.bf16.msra.mxu0 %v1896_v55  ;;  %865 = vmatprep.mubr.bf16.mxu0 %v2121_v54 }
 0x17b   :  { %835 = vmatprep.subr.bf16.mxu0 %v1901_v56 }
 0x17e   :  { %836 = vmatpush1.bf16.msra.mxu0 %v1899_v58 }
 0x17f   :  { %837 = vmatprep.subr.bf16.mxu0 %v1904_v59 }
 0x182   :  { %838 = vmatpush1.bf16.msra.mxu0 %v1902_v60  ;;  %v1960_v60 = vld [vmem:[#allocation10] sm:$0xff]  }
 0x183   :  { %839 = vmatprep.subr.bf16.mxu0 %v1907_v61  ;;  %v1964_v61 = vld [vmem:[#allocation10 + $0x20] sm:$0xff]  }
 0x186   :  { %840 = vmatpush1.bf16.msra.mxu0 %v1905_v62  ;;  %v1965_v62 = vld [vmem:[#allocation10 + $0x28] sm:$0xff]  }
 0x187   :  { %841 = vmatprep.subr.bf16.mxu0 %v1910_v63  ;;  %v1966_v63 = vld [vmem:[#allocation10 + $0x30] sm:$0xff]  }
 0x18a   :  { %842 = vmatpush1.bf16.msra.mxu0 %v1908_v2  ;;  %v1967_v2 = vld [vmem:[#allocation10 + $0x38] sm:$0xff]  }
 0x18b   :  { %843 = vmatprep.subr.bf16.mxu0 %v1913_v3 }
 0x18e   :  { %844 = vmatpush1.bf16.msra.mxu0 %v1911_v7 }
 0x18f   :  { %845 = vmatprep.subr.bf16.mxu0 %v1916_v8 }
 0x190   :  { %v986_v13 = vpop.f32.mrb[8].mxu1 }
 0x191   :  { %v987_v14 = vadd.f32 %v986_v13, %v899_v9  ;;  %v1761_v15 = vpop.f32.mrb[9].mxu1 }
 0x192   :  { %846 = vmatpush1.bf16.msra.mxu0 %v1914_v10  ;;  %v989_v17 = vpop.f32.mrb[10].mxu1 }
 0x193   :  { %847 = vmatprep.subr.bf16.mxu0 %v1919_v12  ;;  %v993_v19 = vmax.f32 %v987_v14, 0.0  ;;  %v990_v20 = vadd.f32 %v989_v17, %v899_v9  ;;  %v1762_v21 = vpop.f32.mrb[11].mxu1 }
 0x195   :  { %v994_v22 = vmax.f32 %v990_v20, 0.0 }
 0x196   :  { %848 = vmatpush1.bf16.msra.mxu0 %v1917_v16 }
 0x197   :  { %1092 = vmatprep.subr.bf16.mxu0 %v1922_v18  ;;  %v995_v24 = vpack.c.bf16 %v994_v22, %v993_v19 }
 0x199   :  { %866 = vmatmul.mubr.bf16.vlgmr.msra.gmra.mrb[4].mxu0 %v736_v57 }
 0x19a   :  { %1093 = vmatpush1.bf16.msra.mxu0 %v1920_v23  ;;  %1124 = vmatprep.mubr.bf16.mxu0 %v2121_v54  ;;  %v1938_v54 = vld [vmem:[#allocation7 + $0x1e0] ss:$8 sps:$4 sm:$0xff]  }
 0x19b   :  { %1094 = vmatprep.subr.bf16.mxu0 %v1925_v6 }
 0x19e   :  { %1095 = vmatpush1.bf16.msra.mxu0 %v1923_v25 }
 0x19f   :  { %1096 = vmatprep.subr.bf16.mxu0 %v1928_v26 }
 0x1a2   :  { %1097 = vmatpush1.bf16.msra.mxu0 %v1926_v27 }
 0x1a3   :  { %1098 = vmatprep.subr.bf16.mxu0 %v1931_v28 }
 0x1a6   :  { %1099 = vmatpush1.bf16.msra.mxu0 %v1929_v29 }
 0x1a7   :  { %1100 = vmatprep.subr.bf16.mxu0 %v1934_v30 }
 0x1aa   :  { %1101 = vmatpush1.bf16.msra.mxu0 %v1932_v31 }
 0x1ab   :  { %1102 = vmatprep.subr.bf16.mxu0 %v1937_v32 }
 0x1ae   :  { %1103 = vmatpush1.bf16.msra.mxu0 %v1935_v33 }
 0x1af   :  { %1104 = vmatprep.subr.bf16.mxu0 %v1940_v34 }
 0x1b2   :  { %1105 = vmatpush1.bf16.msra.mxu0 %v1938_v54 }
 0x1b3   :  { %1106 = vmatprep.subr.bf16.mxu0 %v1943_v35 }
 0x1b6   :  { %1107 = vmatpush1.bf16.msra.mxu0 %v1941_v36 }
 0x1b9   :  { %1125 = vmatmul.mubr.bf16.vlgmr.msra.gmra.mrb[4].mxu0 %v995_v24 }
 0x28c   :  { %v1126_v45 = vpop.f32.mrb[4].mxu0 }
 0x28d   :  { %v1151_v46 = vadd.f32 %v1144_v43, %v1126_v45  ;;  %v1128_v47 = vpop.f32.mrb[5].mxu0 }
 0x28e   :  { %v1152_v48 = vadd.f32 %v1148_v44, %v1128_v47  ;;  %v1130_v49 = vpop.f32.mrb[6].mxu0 }
 0x28f   :  { %v1153_v50 = vadd.f32 %v1144_v43, %v1130_v49  ;;  %v1132_v51 = vpop.f32.mrb[7].mxu0  ;;  %v1155_v53 = vmax.f32 %v1151_v46, 0.0 }
 0x290   :  { %v1154_v52 = vadd.f32 %v1148_v44, %v1132_v51  ;;  %v1156_v56 = vmax.f32 %v1152_v48, 0.0 }
 0x291   :  { %v1157_v55 = vmax.f32 %v1153_v50, 0.0 }
 0x292   :  { %v1158_v57 = vmax.f32 %v1154_v52, 0.0 }
 0x293   :  { %v1159_v58 = vpack.c.bf16 %v1157_v55, %v1155_v53 }
 0x294   :  { %v1160_v59 = vpack.c.bf16 %v1158_v57, %v1156_v56 }
 0x296   :  { %1328 = vmatprep.mubr.bf16.mxu1 %v1160_v59 }
 0x297   :  { %1329 = vmatmul.mubr.bf16.vlgmr.msra.gmra.mrb[12].mxu1 %v1159_v58 }
 0x298   :  { %1764 = vmatpush3.bf16.msra.mxu1 %v1960_v60  ;;  %1779 = vmatprep.mubr.msk.bf16.mxu1 %vm2120_vm0, %v2119_v0 }
 0x299   :  { %1765 = vmatprep.subr.bf16.mxu1 %v2119_v0 }
 0x29c   :  { %1766 = vmatpush3.bf16.msra.mxu1 %v1961_v1 }
 0x29d   :  { %1767 = vmatprep.subr.bf16.mxu1 %v2119_v0 }
 0x2a0   :  { %1768 = vmatpush3.bf16.msra.mxu1 %v1962_v4 }
 0x2a1   :  { %1769 = vmatprep.subr.bf16.mxu1 %v2119_v0 }
 0x2a4   :  { %1770 = vmatpush3.bf16.msra.mxu1 %v1963_v11 }
 0x2a5   :  { %1771 = vmatprep.subr.bf16.mxu1 %v2119_v0 }
 0x2a8   :  { %1772 = vmatpush3.bf16.msra.mxu1 %v1964_v61 }
 0x2a9   :  { %1773 = vmatprep.subr.bf16.mxu1 %v2119_v0 }
 0x2ac   :  { %1774 = vmatpush3.bf16.msra.mxu1 %v1965_v62 }
 0x2ad   :  { %1775 = vmatprep.subr.bf16.mxu1 %v2119_v0 }
 0x2b0   :  { %1776 = vmatpush3.bf16.msra.mxu1 %v1966_v63 }
 0x2b1   :  { %1777 = vmatprep.subr.bf16.mxu1 %v2119_v0  ;;  %v1598_v0 = vld [vmem:[%s2351_s8] ss:$0 sm:$0xff] }
 0x2b4   :  { %1778 = vmatpush3.bf16.msra.mxu1 %v1967_v2 }
 0x36a   :  { %v1668_v3 = vpop.f32.mrb[12].mxu1 }
 0x36b   :  { %v1669_v7 = vpop.f32.mrb[13].mxu1 }
 0x36c   :  { %v1670_v8 = vadd.f32 %v1669_v7, %v1668_v3  ;;  %v1671_v9 = vpop.f32.mrb[14].mxu1 }
 0x36d   :  { %v1672_v10 = vpop.f32.mrb[15].mxu1 }
 0x36e   :  { %v1331_v12 = vadd.f32 %v1670_v8, %v1581_v5  ;;  %v1673_v13 = vadd.f32 %v1672_v10, %v1671_v9 }
 0x370   :  { %v1334_v14 = vadd.f32 %v1673_v13, %v1581_v5  ;;  %v1337_v15 = vmax.f32 %v1331_v12, 0.0 }
 0x372   :  { %v1338_v16 = vmax.f32 %v1334_v14, 0.0 }
 0x374   :  { %v1339_v17 = vpack.c.bf16 %v1338_v16, %v1337_v15 }
 0x376   :  { %1780 = vmatmul.mubr.bf16.vlgmr.msra.gmra.mrb[16].mxu1 %v1339_v17 }
 0x449   :  { %v1445_v18 = vpop.f32.mrb[16].mxu1 }
 0x44a   :  { %v1781_v19 = vpop.f32.mrb[17].mxu1  ;;  %v1446_v21 = vadd.f32 %v1598_v0, %v1445_v18 }
 0x44b   :  { %v1448_v20 = vpop.f32.mrb[18].mxu1 }
 0x44c   :  { %v1449_v22 = vadd.f32 %v1598_v0, %v1448_v20  ;;  %v1782_v23 = vpop.f32.mrb[19].mxu1 }
 0x44e   :  { %v1614_v6 = vpack.c.bf16 %v1449_v22, %v1446_v21 }
 0x450   :  { %1615 = vst [vmem:[#allocation11] sm:$0xff] %v1614_v6  }
 0x451   :  { %2089 = shalt.err (!%p2086_p2)
}
 0x452   :  { %s2090_s26 = scalar_lea.hbm %s2352_s9, 128 }
 0x453   :  { %p2091_p3 = scmp.ne.s32.totalorder %s2352_s9, %s2090_s26  ;;  %p2094_p4 = scmp.lt.u32.totalorder %s2090_s26, %s2352_s9 }
 0x455   :  { %p2096_p5 = pnand %p2094_p4, %p2091_p3 }
 0x457   :  { %2099 = shalt.err (!%p2096_p5)
}
 0x458   :  { %1473 = dma.vmem_to_hbm [thread:$0]  %s1468_s6, 128, %s2352_s9, [#allocation4], %s2109_s19, %s2109_s19, %s2110_s20  }
 0x459   :  { %2106 = dma.done.wait [#allocation4], 128  }
 0x45a   :  { %2107 = vsyncadd [#allocation4], 4294967168 }
 0x45b   :  { %1477 = vsyncpa [#allocation3], 1 }
 0x45c   :  { %1478 = vsyncpa [#allocation6], 1 }
 0x45d   :  { %1479 = vsyncpa [#allocation9], 1 }
 0x45e   :  { %1480 = vsyncpa [#allocation4], 1 }

// kernel: tpu_custom_call.1
= control target key start
LH: loop header
LB: loop body
LE: loop exit
PB: predicated region body
PF: predicated region fallthrough
CT: control target
= control target key end

     0   :  { %14 = vsyncpa [#allocation3], 0  ;;  %s2343_s0 = inlined_call_operand.hbm [shape: bf16[16,512], index: 0, kind: input, shape index: {}]   ;;  %s2344_s1 = inlined_call_operand.hbm [shape: bf16[512,128], index: 1, kind: input, shape index: {}]   ;;  %s2345_s2 = inlined_call_operand.vmem [shape: f32[4,128], index: 2, kind: input, shape index: {}]   ;;  %s2346_s3 = inlined_call_operand.hbm [shape: bf16[512,256], index: 3, kind: input, shape index: {}]   ;;  %s2347_s4 = inlined_call_operand.vmem [shape: f32[1,256], index: 4, kind: input, shape index: {}]   ;;  %s2348_s5 = inlined_call_operand.hbm [shape: bf16[256,128], index: 5, kind: input, shape index: {}]   ;;  %s2349_s6 = inlined_call_operand.vmem [shape: f32[1,128], index: 6, kind: input, shape index: {}]   ;;  %s2350_s7 = inlined_call_operand.hbm [shape: bf16[128,128], index: 7, kind: input, shape index: {}]   ;;  %s2351_s8 = inlined_call_operand.vmem [shape: f32[1,128], index: 8, kind: input, shape index: {}]   ;;  %s2352_s9 = inlined_call_operand.hbm [shape: bf16[16,128], index: 9, kind: output, shape index: {}]  }
   0x1   :  { %15 = vsyncpa [#allocation6], 0 }
   0x2   :  { %16 = vsyncpa [#allocation9], 0 }
   0x3   :  { %17 = vsyncpa [#allocation4], 0  ;;  %s2108_s30 = smov [#allocation5]   ;;  %s1968_s13 = scalar_lea.hbm %s2344_s1, 4096 }
   0x4   :  { %s35_s10 = sshll.u32 %s2108_s30, 4  ;;  %p1969_p0 = scmp.ne.s32.totalorder %s2344_s1, %s1968_s13  ;;  %s36_s10 = int_to_ptr.vmem [resolvable:$true] %s35_s10 }
   0x5   :  { %p1972_p1 = scmp.lt.u32.totalorder %s1968_s13, %s2344_s1 }
   0x7   :  { %p1974_p2 = pnand %p1972_p1, %p1969_p0 }
   0x9   :  { %1977 = shalt.err (!%p1974_p2)
}
   0xa   :  { %s1978_s18 = scalar_lea.vmem %s36_s10, 4096  ;;  %p1983_p4 = scmp.lt.s32.totalorder %s36_s10, %s36_s10 }
   0xb   :  { %p1979_p3 = scmp.ne.s32.totalorder %s36_s10, %s1978_s18  ;;  %p1984_p5 = scmp.lt.s32.totalorder %s1978_s18, %s1978_s18 }
   0xd   :  { %p1985_p6 = por %p1984_p5, %p1983_p4 }
   0xf   :  { %p1986_p7 = pnand %p1985_p6, %p1979_p3 }
  0x11   :  { %1989 = shalt.err (!%p1986_p7)
}
  0x12   :  { %s2109_s19 = smov 64   ;;  %s2110_s20 = smov 4  }
  0x13   :  { %41 = dma.hbm_to_vmem [thread:$0]  %s2344_s1, 4096, %s36_s10, [#allocation6], %s2109_s19, %s2109_s19, %s2110_s20  }
  0x14   :  { %s2111_s23 = smov [#allocation8]   ;;  %s2112_s25 = smov [#allocation2]  }
  0x15   :  { %s63_s24 = sshll.u32 %s2111_s23, 4  ;;  %s23_s26 = sshll.u32 %s2112_s25, 4  ;;  %s64_s24 = int_to_ptr.vmem [resolvable:$true] %s63_s24  ;;  %s24_s26 = int_to_ptr.vmem [resolvable:$true] %s23_s26 }
  0x16   :  { %s1990_s29 = scalar_lea.hbm %s2348_s5, 2048 }
  0x17   :  { %p1991_p8 = scmp.ne.s32.totalorder %s2348_s5, %s1990_s29  ;;  %p1994_p9 = scmp.lt.u32.totalorder %s1990_s29, %s2348_s5 }
  0x19   :  { %p1996_p10 = pnand %p1994_p9, %p1991_p8 }
  0x1b   :  { %1999 = shalt.err (!%p1996_p10)
}
  0x1c   :  { %s2000_s1 = scalar_lea.vmem %s64_s24, 2048  ;;  %p2005_p12 = scmp.lt.s32.totalorder %s64_s24, %s64_s24 }
  0x1d   :  { %p2001_p11 = scmp.ne.s32.totalorder %s64_s24, %s2000_s1  ;;  %p2006_p13 = scmp.lt.s32.totalorder %s2000_s1, %s2000_s1 }
  0x1f   :  { %p2007_p0 = por %p2006_p13, %p2005_p12 }
  0x21   :  { %p2008_p1 = pnand %p2007_p0, %p2001_p11 }
  0x23   :  { %2011 = shalt.err (!%p2008_p1)
}
  0x24   :  { %69 = dma.hbm_to_vmem [thread:$0]  %s2348_s5, 2048, %s64_s24, [#allocation9], %s2109_s19, %s2109_s19, %s2110_s20  }
  0x25   :  { %s2012_s17 = scalar_lea.hbm %s2343_s0, 512 }
  0x26   :  { %p2013_p2 = scmp.ne.s32.totalorder %s2343_s0, %s2012_s17  ;;  %p2016_p3 = scmp.lt.u32.totalorder %s2012_s17, %s2343_s0 }
  0x28   :  { %p2018_p4 = pnand %p2016_p3, %p2013_p2 }
  0x2a   :  { %2021 = shalt.err (!%p2018_p4)
}
  0x2b   :  { %s2022_s25 = scalar_lea.vmem %s24_s26, 512  ;;  %p2027_p6 = scmp.lt.s32.totalorder %s24_s26, %s24_s26 }
  0x2c   :  { %p2023_p5 = scmp.ne.s32.totalorder %s24_s26, %s2022_s25  ;;  %p2028_p7 = scmp.lt.s32.totalorder %s2022_s25, %s2022_s25 }
  0x2e   :  { %p2029_p8 = por %p2028_p7, %p2027_p6 }
  0x30   :  { %p2030_p9 = pnand %p2029_p8, %p2023_p5 }
  0x32   :  { %2033 = shalt.err (!%p2030_p9)
}
  0x33   :  { %s2113_s5 = smov 256   ;;  %s2114_s24 = smov 16  }
  0x34   :  { %29 = dma.hbm_to_vmem [thread:$0]  %s2343_s0, 512, %s24_s26, [#allocation3], %s2113_s5, %s2113_s5, %s2114_s24  }
  0x35   :  { %s2115_s29 = smov [#allocation7]   ;;  %s2034_s13 = scalar_lea.hbm %s2346_s3, 8192 }
  0x36   :  { %s49_s30 = sshll.u32 %s2115_s29, 4  ;;  %p2035_p10 = scmp.ne.s32.totalorder %s2346_s3, %s2034_s13  ;;  %s50_s30 = int_to_ptr.vmem [resolvable:$true] %s49_s30 }
  0x37   :  { %p2038_p11 = scmp.lt.u32.totalorder %s2034_s13, %s2346_s3 }
  0x39   :  { %p2040_p12 = pnand %p2038_p11, %p2035_p10 }
  0x3b   :  { %2043 = shalt.err (!%p2040_p12)
}
  0x3c   :  { %s2044_s16 = scalar_lea.vmem %s50_s30, 8192  ;;  %p2049_p0 = scmp.lt.s32.totalorder %s50_s30, %s50_s30 }
  0x3d   :  { %p2045_p13 = scmp.ne.s32.totalorder %s50_s30, %s2044_s16  ;;  %p2050_p1 = scmp.lt.s32.totalorder %s2044_s16, %s2044_s16 }
  0x3f   :  { %p2051_p2 = por %p2050_p1, %p2049_p0 }
  0x41   :  { %p2052_p3 = pnand %p2051_p2, %p2045_p13 }
  0x43   :  { %2055 = shalt.err (!%p2052_p3)
}
  0x44   :  { %s2116_s0 = smov 128   ;;  %s2117_s26 = smov 8  }
  0x45   :  { %55 = dma.hbm_to_vmem [thread:$0]  %s2346_s3, 8192, %s50_s30, [#allocation6], %s2116_s0, %s2116_s0, %s2117_s26  }
  0x46   :  { %s2118_s21 = smov [#allocation10]   ;;  %s2056_s5 = scalar_lea.hbm %s2350_s7, 1024 }
  0x47   :  { %s77_s22 = sshll.u32 %s2118_s21, 4  ;;  %p2057_p4 = scmp.ne.s32.totalorder %s2350_s7, %s2056_s5  ;;  %s78_s22 = int_to_ptr.vmem [resolvable:$true] %s77_s22 }
  0x48   :  { %p2060_p5 = scmp.lt.u32.totalorder %s2056_s5, %s2350_s7 }
  0x4a   :  { %p2062_p6 = pnand %p2060_p5, %p2057_p4 }
  0x4c   :  { %2065 = shalt.err (!%p2062_p6)
}
  0x4d   :  { %s2066_s11 = scalar_lea.vmem %s78_s22, 1024  ;;  %p2071_p8 = scmp.lt.s32.totalorder %s78_s22, %s78_s22 }
  0x4e   :  { %p2067_p7 = scmp.ne.s32.totalorder %s78_s22, %s2066_s11  ;;  %p2072_p9 = scmp.lt.s32.totalorder %s2066_s11, %s2066_s11 }
  0x50   :  { %p2073_p10 = por %p2072_p9, %p2071_p8 }
  0x52   :  { %p2074_p11 = pnand %p2073_p10, %p2067_p7 }
  0x54   :  { %2077 = shalt.err (!%p2074_p11)
}
  0x55   :  { %83 = dma.hbm_to_vmem [thread:$0]  %s2350_s7, 1024, %s78_s22, [#allocation9], %s2109_s19, %s2109_s19, %s2110_s20  }
  0x56   :  { %2100 = dma.done.wait [#allocation3], 512  }
  0x57   :  { %2101 = vsyncadd [#allocation3], 4294966784 }
  0x58   :  { %2102 = dma.done.wait [#allocation6], 12288  }
  0x59   :  { %2103 = vsyncadd [#allocation6], 4294955008 }
  0x5a   :  { %2104 = dma.done.wait [#allocation9], 3072  }
  0x5b   :  { %2105 = vsyncadd [#allocation9], 4294964224  ;;  %v2119_v0 = vmov 0.0   ;;  %vm2120_vm0 = vmmov 0   ;;  %v1810_v1 = vld [vmem:[#allocation5 + $0x40] sm:$0xff]   ;;  %v1811_v2 = vld [vmem:[#allocation5 + $0x48] sm:$0xff]   ;;  %v123_v61 = vlaneseq }
  0x5c   :  { %1703 = vmatprep.subr.bf16.mxu1 %v2119_v0  ;;  %1683 = vmatprep.subr.bf16.mxu0 %v2119_v0  ;;  %v1812_v3 = vld [vmem:[#allocation5 + $0x50] sm:$0xff]   ;;  %v1818_v4 = vld [vmem:[#allocation5] sm:$0xff]   ;;  %v1813_v5 = vld [vmem:[#allocation5 + $0x58] sm:$0xff]   ;;  %v2121_v54 = vmov 0   ;;  %s2122_s15 = smov [#allocation11]  }
  0x5d   :  { %1719 = vmatprep.mubr.msk.bf16.mxu1 %vm2120_vm0, %v2119_v0  ;;  %1699 = vmatprep.mubr.msk.bf16.mxu0 %vm2120_vm0, %v2119_v0  ;;  %v1821_v6 = vld [vmem:[#allocation5 + $0x8] sm:$0xff]   ;;  %v1814_v7 = vld [vmem:[#allocation5 + $0x60] sm:$0xff]   ;;  %v1822_v8 = vld [vmem:[#allocation5 + $0x10] sm:$0xff]  }
  0x5e   :  { %1704 = vmatpush3.bf16.msra.mxu1 %v1810_v1  ;;  %1684 = vmatpush3.bf16.msra.mxu0 %v1818_v4  ;;  %v1815_v9 = vld [vmem:[#allocation5 + $0x68] sm:$0xff]   ;;  %v1823_v10 = vld [vmem:[#allocation5 + $0x18] sm:$0xff]   ;;  %v1816_v11 = vld [vmem:[#allocation5 + $0x70] sm:$0xff]   ;;  %v2283_v1 = vshrl.u32 %v123_v61, 7 }
  0x5f   :  { %1705 = vmatprep.subr.bf16.mxu1 %v2119_v0  ;;  %1685 = vmatprep.subr.bf16.mxu0 %v2119_v0  ;;  %v1824_v12 = vld [vmem:[#allocation5 + $0x20] sm:$0xff]   ;;  %v1817_v13 = vld [vmem:[#allocation5 + $0x78] sm:$0xff]   ;;  %v1825_v14 = vld [vmem:[#allocation5 + $0x28] sm:$0xff]  }
  0x60   :  { %v1819_v15 = vld [vmem:[#allocation2 + $0x4] ss:$16 sps:$4 sm:$0xff]   ;;  %v1827_v18 = vld [vmem:[#allocation5 + $0x38] sm:$0xff]   ;;  %v1830_v19 = vld [vmem:[#allocation5 + $0x88] sm:$0xff]   ;;  %v259_v4 = vsub.s32 1, %v2283_v1 }
  0x61   :  { %v1826_v16 = vld [vmem:[#allocation5 + $0x30] sm:$0xff]   ;;  %v1829_v17 = vld [vmem:[#allocation5 + $0x80] sm:$0xff]   ;;  %v1832_v25 = vld [vmem:[#allocation5 + $0x98] sm:$0xff]  }
  0x62   :  { %1706 = vmatpush3.bf16.msra.mxu1 %v1811_v2  ;;  %1686 = vmatpush3.bf16.msra.mxu0 %v1821_v6  ;;  %v1850_v20 = vld [vmem:[#allocation7 + $0x84] ss:$8 sps:$4 sm:$0xff]   ;;  %v1828_v21 = vld [vmem:[#allocation2] ss:$16 sps:$4 sm:$0xff]   ;;  %v1853_v24 = vld [vmem:[#allocation7 + $0x94] ss:$8 sps:$4 sm:$0xff]  }
  0x63   :  { %1707 = vmatprep.subr.bf16.mxu1 %v2119_v0  ;;  %1687 = vmatprep.subr.bf16.mxu0 %v2119_v0  ;;  %v1831_v22 = vld [vmem:[#allocation5 + $0x90] sm:$0xff]   ;;  %v1848_v23 = vld [vmem:[#allocation7 + $0x80] ss:$8 sps:$4 sm:$0xff]   ;;  %v1856_v27 = vld [vmem:[#allocation7 + $0xa4] ss:$8 sps:$4 sm:$0xff]  }
  0x64   :  { %v1851_v26 = vld [vmem:[#allocation7 + $0x90] ss:$8 sps:$4 sm:$0xff]   ;;  %v1833_v28 = vld [vmem:[#allocation5 + $0xa0] sm:$0xff]   ;;  %v1859_v30 = vld [vmem:[#allocation7 + $0xb4] ss:$8 sps:$4 sm:$0xff]  }
  0x65   :  { %v1854_v29 = vld [vmem:[#allocation7 + $0xa0] ss:$8 sps:$4 sm:$0xff]   ;;  %v1857_v32 = vld [vmem:[#allocation7 + $0xb0] ss:$8 sps:$4 sm:$0xff]   ;;  %v1862_v33 = vld [vmem:[#allocation7 + $0xc4] ss:$8 sps:$4 sm:$0xff]  }
  0x66   :  { %1708 = vmatpush3.bf16.msra.mxu1 %v1812_v3  ;;  %1688 = vmatpush3.bf16.msra.mxu0 %v1822_v8  ;;  %v1834_v31 = vld [vmem:[#allocation5 + $0xa8] sm:$0xff]   ;;  %v1835_v34 = vld [vmem:[#allocation5 + $0xb0] sm:$0xff]   ;;  %v1836_v37 = vld [vmem:[#allocation5 + $0xb8] sm:$0xff]  }
  0x67   :  { %1709 = vmatprep.subr.bf16.mxu1 %v2119_v0  ;;  %1689 = vmatprep.subr.bf16.mxu0 %v2119_v0  ;;  %v1860_v35 = vld [vmem:[#allocation7 + $0xc0] ss:$8 sps:$4 sm:$0xff]   ;;  %v1865_v36 = vld [vmem:[#allocation7 + $0xd4] ss:$8 sps:$4 sm:$0xff]   ;;  %v1863_v38 = vld [vmem:[#allocation7 + $0xd0] ss:$8 sps:$4 sm:$0xff]  }
  0x68   :  { %v1837_v39 = vld [vmem:[#allocation2 + $0x8] ss:$16 sps:$4 sm:$0xff]   ;;  %v1839_v40 = vld [vmem:[#allocation5 + $0xc0] sm:$0xff]   ;;  %v1841_v42 = vld [vmem:[#allocation5 + $0xd0] sm:$0xff]  }
  0x69   :  { %v1840_v41 = vld [vmem:[#allocation5 + $0xc8] sm:$0xff]   ;;  %v1842_v43 = vld [vmem:[#allocation5 + $0xd8] sm:$0xff]   ;;  %v1843_v44 = vld [vmem:[#allocation5 + $0xe0] sm:$0xff]  }
  0x6a   :  { %1710 = vmatpush3.bf16.msra.mxu1 %v1813_v5  ;;  %1690 = vmatpush3.bf16.msra.mxu0 %v1823_v10  ;;  %v1844_v45 = vld [vmem:[#allocation5 + $0xe8] sm:$0xff]   ;;  %v1845_v46 = vld [vmem:[#allocation5 + $0xf0] sm:$0xff]   ;;  %v1846_v47 = vld [vmem:[#allocation5 + $0xf8] sm:$0xff]  }
  0x6b   :  { %1711 = vmatprep.subr.bf16.mxu1 %v2119_v0  ;;  %1691 = vmatprep.subr.bf16.mxu0 %v2119_v0  ;;  %v1847_v48 = vld [vmem:[#allocation2 + $0xc] ss:$16 sps:$4 sm:$0xff]   ;;  %v1866_v50 = vld [vmem:[#allocation7 + $0xe0] ss:$8 sps:$4 sm:$0xff]   ;;  %v1869_v52 = vld [vmem:[#allocation7 + $0xf0] ss:$8 sps:$4 sm:$0xff]  }
  0x6c   :  { %v1868_v49 = vld [vmem:[#allocation7 + $0xe4] ss:$8 sps:$4 sm:$0xff]   ;;  %v1871_v51 = vld [vmem:[#allocation7 + $0xf4] ss:$8 sps:$4 sm:$0xff]   ;;  %v2289_v6 = vld [vmem:[%s2345_s2] sm:$0xf] }
  0x6d   :  { %v1874_v53 = vld [vmem:[#allocation7 + $0x4] ss:$8 sps:$4 sm:$0xff]   ;;  %v1948_v59 = vld [vmem:[#allocation8 + $0x50] sm:$0xff]   ;;  %v1950_v62 = vld [vmem:[#allocation8 + $0x58] sm:$0xff]  }
  0x6e   :  { %1712 = vmatpush3.bf16.msra.mxu1 %v1814_v7  ;;  %1692 = vmatpush3.bf16.msra.mxu0 %v1824_v12  ;;  %v1944_v55 = vld [vmem:[#allocation8 + $0x40] sm:$0xff]   ;;  %v1946_v57 = vld [vmem:[#allocation8 + $0x48] sm:$0xff]   ;;  %v1949_v60 = vld [vmem:[#allocation8 + $0x10] sm:$0xff]   ;;  %v260_v7 = vrot.slane %v2289_v6, %v259_v4 }
  0x6f   :  { %1713 = vmatprep.subr.bf16.mxu1 %v2119_v0  ;;  %1693 = vmatprep.subr.bf16.mxu0 %v2119_v0  ;;  %v1945_v56 = vld [vmem:[#allocation8] sm:$0xff]   ;;  %v1947_v58 = vld [vmem:[#allocation8 + $0x8] sm:$0xff]   ;;  %v1951_v63 = vld [vmem:[#allocation8 + $0x18] sm:$0xff]  }
  0x70   :  { %v1952_v2 = vld [vmem:[#allocation8 + $0x60] sm:$0xff]   ;;  %v1954_v5 = vld [vmem:[#allocation8 + $0x68] sm:$0xff]   ;;  %v1907_v61 = vld [vmem:[#allocation7 + $0x134] ss:$8 sps:$4 sm:$0xff]  }
  0x71   :  { %v1953_v3 = vld [vmem:[#allocation8 + $0x20] sm:$0xff]  }
  0x72   :  { %1714 = vmatpush3.bf16.msra.mxu1 %v1815_v9  ;;  %1694 = vmatpush3.bf16.msra.mxu0 %v1825_v14 }
  0x73   :  { %1715 = vmatprep.subr.bf16.mxu1 %v2119_v0  ;;  %1695 = vmatprep.subr.bf16.mxu0 %v2119_v0 }
  0x76   :  { %1716 = vmatpush3.bf16.msra.mxu1 %v1816_v11  ;;  %1696 = vmatpush3.bf16.msra.mxu0 %v1826_v16  ;;  %v125_v11 = vsub.s32 0, %v2283_v1 }
  0x77   :  { %1717 = vmatprep.subr.bf16.mxu1 %v2119_v0  ;;  %1697 = vmatprep.subr.bf16.mxu0 %v2119_v0 }
  0x7a   :  { %1718 = vmatpush3.bf16.msra.mxu1 %v1817_v13  ;;  %1698 = vmatpush3.bf16.msra.mxu0 %v1827_v18  ;;  %v1872_v18 = vld [vmem:[#allocation7] ss:$8 sps:$4 sm:$0xff]  }
  0x7b   :  { %1723 = vmatprep.subr.bf16.mxu1 %v2119_v0  ;;  %453 = vmatprep.subr.bf16.mxu0 %v1850_v20  ;;  %v1877_v20 = vld [vmem:[#allocation7 + $0x14] ss:$8 sps:$4 sm:$0xff]  }
  0x7d   :  { %1720 = vmatmul.mubr.bf16.vlgmr.msra.gmra.mrb[0].mxu1 %v1819_v15  ;;  %1700 = vmatmul.mubr.bf16.vlgmr.msra.gmra.mrb[0].mxu0 %v1828_v21 }
  0x7e   :  { %1724 = vmatpush3.bf16.msra.mxu1 %v1829_v17  ;;  %1739 = vmatprep.mubr.msk.bf16.mxu1 %vm2120_vm0, %v2119_v0  ;;  %v126_v17 = vrot.slane %v2289_v6, %v125_v11 }
  0x7f   :  { %1725 = vmatprep.subr.bf16.mxu1 %v2119_v0  ;;  %454 = vmatpush1.bf16.msra.mxu0 %v1848_v23 }
  0x80   :  { %455 = vmatprep.subr.bf16.mxu0 %v1853_v24  ;;  %485 = vmatprep.mubr.bf16.mxu0 %v2121_v54  ;;  %v1875_v24 = vld [vmem:[#allocation7 + $0x10] ss:$8 sps:$4 sm:$0xff]  }
  0x82   :  { %1726 = vmatpush3.bf16.msra.mxu1 %v1830_v19 }
  0x83   :  { %1727 = vmatprep.subr.bf16.mxu1 %v2119_v0  ;;  %456 = vmatpush1.bf16.msra.mxu0 %v1851_v26  ;;  %v1880_v26 = vld [vmem:[#allocation7 + $0x24] ss:$8 sps:$4 sm:$0xff]  }
  0x84   :  { %457 = vmatprep.subr.bf16.mxu0 %v1856_v27 }
  0x86   :  { %1728 = vmatpush3.bf16.msra.mxu1 %v1831_v22 }
  0x87   :  { %1729 = vmatprep.subr.bf16.mxu1 %v2119_v0  ;;  %458 = vmatpush1.bf16.msra.mxu0 %v1854_v29 }
  0x88   :  { %459 = vmatprep.subr.bf16.mxu0 %v1859_v30 }
  0x8a   :  { %1730 = vmatpush3.bf16.msra.mxu1 %v1832_v25 }
  0x8b   :  { %1731 = vmatprep.subr.bf16.mxu1 %v2119_v0  ;;  %460 = vmatpush1.bf16.msra.mxu0 %v1857_v32  ;;  %v1883_v32 = vld [vmem:[#allocation7 + $0x34] ss:$8 sps:$4 sm:$0xff]  }
  0x8c   :  { %461 = vmatprep.subr.bf16.mxu0 %v1862_v33 }
  0x8e   :  { %1732 = vmatpush3.bf16.msra.mxu1 %v1833_v28 }
  0x8f   :  { %1733 = vmatprep.subr.bf16.mxu1 %v2119_v0  ;;  %462 = vmatpush1.bf16.msra.mxu0 %v1860_v35  ;;  %v1886_v35 = vld [vmem:[#allocation7 + $0x44] ss:$8 sps:$4 sm:$0xff]  }
  0x90   :  { %463 = vmatprep.subr.bf16.mxu0 %v1865_v36  ;;  %v1884_v36 = vld [vmem:[#allocation7 + $0x40] ss:$8 sps:$4 sm:$0xff]  }
  0x92   :  { %1734 = vmatpush3.bf16.msra.mxu1 %v1834_v31  ;;  %v1878_v31 = vld [vmem:[#allocation7 + $0x20] ss:$8 sps:$4 sm:$0xff]  }
  0x93   :  { %1735 = vmatprep.subr.bf16.mxu1 %v2119_v0  ;;  %464 = vmatpush1.bf16.msra.mxu0 %v1863_v38  ;;  %v637_v38 = vsub.s32 2, %v2283_v1 }
  0x94   :  { %465 = vmatprep.subr.bf16.mxu0 %v1868_v49  ;;  %v1898_v49 = vld [vmem:[#allocation7 + $0x104] ss:$8 sps:$4 sm:$0xff]  }
  0x96   :  { %1736 = vmatpush3.bf16.msra.mxu1 %v1835_v34  ;;  %v1881_v34 = vld [vmem:[#allocation7 + $0x30] ss:$8 sps:$4 sm:$0xff]  }
  0x97   :  { %1737 = vmatprep.subr.bf16.mxu1 %v2119_v0  ;;  %466 = vmatpush1.bf16.msra.mxu0 %v1866_v50 }
  0x98   :  { %467 = vmatprep.subr.bf16.mxu0 %v1871_v51 }
  0x9a   :  { %1738 = vmatpush3.bf16.msra.mxu1 %v1836_v37  ;;  %v1889_v37 = vld [vmem:[#allocation7 + $0x54] ss:$8 sps:$4 sm:$0xff]  }
  0x9b   :  { %1743 = vmatprep.subr.bf16.mxu1 %v2119_v0  ;;  %468 = vmatpush1.bf16.msra.mxu0 %v1869_v52 }
  0x9c   :  { %576 = vmatprep.subr.bf16.mxu0 %v1874_v53 }
  0x9d   :  { %1740 = vmatmul.mubr.bf16.vlgmr.msra.gmra.mrb[4].mxu1 %v1837_v39  ;;  %v1887_v39 = vld [vmem:[#allocation7 + $0x50] ss:$8 sps:$4 sm:$0xff]  }
  0x9e   :  { %1744 = vmatpush3.bf16.msra.mxu1 %v1839_v40  ;;  %1759 = vmatprep.mubr.msk.bf16.mxu1 %vm2120_vm0, %v2119_v0  ;;  %v1892_v40 = vld [vmem:[#allocation7 + $0x64] ss:$8 sps:$4 sm:$0xff]  }
  0x9f   :  { %1745 = vmatprep.subr.bf16.mxu1 %v2119_v0 }
  0xa2   :  { %1746 = vmatpush3.bf16.msra.mxu1 %v1840_v41  ;;  %v638_v41 = vrot.slane %v2289_v6, %v637_v38  ;;  %v1956_v38 = vld [vmem:[#allocation8 + $0x70] sm:$0xff]  }
  0xa3   :  { %1747 = vmatprep.subr.bf16.mxu1 %v2119_v0 }
  0xa6   :  { %1748 = vmatpush3.bf16.msra.mxu1 %v1841_v42  ;;  %v1890_v42 = vld [vmem:[#allocation7 + $0x60] ss:$8 sps:$4 sm:$0xff]  }
  0xa7   :  { %1749 = vmatprep.subr.bf16.mxu1 %v2119_v0 }
  0xaa   :  { %1750 = vmatpush3.bf16.msra.mxu1 %v1842_v43  ;;  %v1895_v43 = vld [vmem:[#allocation7 + $0x74] ss:$8 sps:$4 sm:$0xff]  }
  0xab   :  { %1751 = vmatprep.subr.bf16.mxu1 %v2119_v0 }
  0xae   :  { %1752 = vmatpush3.bf16.msra.mxu1 %v1843_v44 }
  0xaf   :  { %1753 = vmatprep.subr.bf16.mxu1 %v2119_v0 }
  0xb2   :  { %1754 = vmatpush3.bf16.msra.mxu1 %v1844_v45 }
  0xb3   :  { %1755 = vmatprep.subr.bf16.mxu1 %v2119_v0 }
  0xb6   :  { %1756 = vmatpush3.bf16.msra.mxu1 %v1845_v46 }
  0xb7   :  { %1757 = vmatprep.subr.bf16.mxu1 %v2119_v0 }
  0xba   :  { %1758 = vmatpush3.bf16.msra.mxu1 %v1846_v47  ;;  %v1893_v47 = vld [vmem:[#allocation7 + $0x70] ss:$8 sps:$4 sm:$0xff]  }
  0xbb   :  { %1652 = vmatprep.subr.bf16.mxu1 %v1944_v55  ;;  %v1896_v55 = vld [vmem:[#allocation7 + $0x100] ss:$8 sps:$4 sm:$0xff]  }
  0xbd   :  { %1760 = vmatmul.mubr.bf16.vlgmr.msra.gmra.mrb[8].mxu1 %v1847_v48 }
  0xbe   :  { %1653 = vmatpush3.bf16.msra.mxu1 %v1945_v56  ;;  %v1901_v56 = vld [vmem:[#allocation7 + $0x114] ss:$8 sps:$4 sm:$0xff]  }
  0xbf   :  { %1654 = vmatprep.subr.bf16.mxu1 %v1946_v57 }
  0xc2   :  { %1655 = vmatpush3.bf16.msra.mxu1 %v1947_v58  ;;  %v1899_v58 = vld [vmem:[#allocation7 + $0x110] ss:$8 sps:$4 sm:$0xff]  }
  0xc3   :  { %1656 = vmatprep.subr.bf16.mxu1 %v1948_v59  ;;  %v1904_v59 = vld [vmem:[#allocation7 + $0x124] ss:$8 sps:$4 sm:$0xff]  }
  0xc6   :  { %1657 = vmatpush3.bf16.msra.mxu1 %v1949_v60  ;;  %v1902_v60 = vld [vmem:[#allocation7 + $0x120] ss:$8 sps:$4 sm:$0xff]  }
  0xc7   :  { %1658 = vmatprep.subr.bf16.mxu1 %v1950_v62  ;;  %v1905_v62 = vld [vmem:[#allocation7 + $0x130] ss:$8 sps:$4 sm:$0xff]  }
  0xca   :  { %1659 = vmatpush3.bf16.msra.mxu1 %v1951_v63  ;;  %v1910_v63 = vld [vmem:[#allocation7 + $0x144] ss:$8 sps:$4 sm:$0xff]  }
  0xcb   :  { %1660 = vmatprep.subr.bf16.mxu1 %v1952_v2  ;;  %v1908_v2 = vld [vmem:[#allocation7 + $0x140] ss:$8 sps:$4 sm:$0xff]  }
  0xce   :  { %1661 = vmatpush3.bf16.msra.mxu1 %v1953_v3  ;;  %v1913_v3 = vld [vmem:[#allocation7 + $0x154] ss:$8 sps:$4 sm:$0xff]  }
  0xcf   :  { %1662 = vmatprep.subr.bf16.mxu1 %v1954_v5  ;;  %v898_v5 = vsub.s32 3, %v2283_v1  ;;  %v1961_v1 = vld [vmem:[#allocation10 + $0x8] sm:$0xff]  }
 0x150   :  { %v347_v8 = vpop.f32.mrb[0].mxu1  ;;  %v215_v21 = vpop.f32.mrb[0].mxu0 }
 0x151   :  { %v348_v9 = vadd.f32 %v347_v8, %v260_v7  ;;  %v1721_v10 = vpop.f32.mrb[1].mxu1  ;;  %v216_v22 = vadd.f32 %v215_v21, %v126_v17  ;;  %v1701_v23 = vpop.f32.mrb[1].mxu0  ;;  %v1916_v8 = vld [vmem:[#allocation7 + $0x164] ss:$8 sps:$4 sm:$0xff]  }
 0x152   :  { %v350_v12 = vpop.f32.mrb[2].mxu1  ;;  %v218_v25 = vpop.f32.mrb[2].mxu0  ;;  %v1914_v10 = vld [vmem:[#allocation7 + $0x160] ss:$8 sps:$4 sm:$0xff]  }
 0x153   :  { %v351_v13 = vadd.f32 %v350_v12, %v260_v7  ;;  %v1722_v14 = vpop.f32.mrb[3].mxu1  ;;  %v354_v15 = vmax.f32 %v348_v9, 0.0  ;;  %v222_v27 = vmax.f32 %v216_v22, 0.0  ;;  %v219_v28 = vadd.f32 %v218_v25, %v126_v17  ;;  %v1702_v29 = vpop.f32.mrb[3].mxu0  ;;  %v1911_v7 = vld [vmem:[#allocation7 + $0x150] ss:$8 sps:$4 sm:$0xff]  }
 0x154   :  { %v899_v9 = vrot.slane %v2289_v6, %v898_v5  ;;  %v1919_v12 = vld [vmem:[#allocation7 + $0x174] ss:$8 sps:$4 sm:$0xff]   ;;  %v1920_v23 = vld [vmem:[#allocation7 + $0x180] ss:$8 sps:$4 sm:$0xff]   ;;  %v1923_v25 = vld [vmem:[#allocation7 + $0x190] ss:$8 sps:$4 sm:$0xff]  }
 0x155   :  { %v355_v16 = vmax.f32 %v351_v13, 0.0  ;;  %v223_v30 = vmax.f32 %v219_v28, 0.0  ;;  %v1925_v6 = vld [vmem:[#allocation7 + $0x194] ss:$8 sps:$4 sm:$0xff]   ;;  %v1929_v29 = vld [vmem:[#allocation7 + $0x1b0] ss:$8 sps:$4 sm:$0xff]  }
 0x156   :  { %v1931_v28 = vld [vmem:[#allocation7 + $0x1b4] ss:$8 sps:$4 sm:$0xff]   ;;  %v1581_v5 = vld [vmem:[%s2349_s6] ss:$0 sm:$0xff]  ;;  %s1467_s6 = sshll.u32 %s2122_s15, 4  ;;  %s1468_s6 = int_to_ptr.vmem [resolvable:$true] %s1467_s6 }
 0x157   :  { %v356_v19 = vpack.c.bf16 %v355_v16, %v354_v15  ;;  %v224_v33 = vpack.c.bf16 %v223_v30, %v222_v27  ;;  %v1917_v16 = vld [vmem:[#allocation7 + $0x170] ss:$8 sps:$4 sm:$0xff]   ;;  %v1926_v27 = vld [vmem:[#allocation7 + $0x1a0] ss:$8 sps:$4 sm:$0xff]   ;;  %v1934_v30 = vld [vmem:[#allocation7 + $0x1c4] ss:$8 sps:$4 sm:$0xff]   ;;  %p2083_p13 = scmp.lt.s32.totalorder %s1468_s6, %s1468_s6 }
 0x158   :  { %s2078_s16 = scalar_lea.vmem %s1468_s6, 128 }
 0x159   :  { %486 = vmatmul.mubr.bf16.vlgmr.msra.gmra.mrb[4].mxu0 %v356_v19  ;;  %p2079_p12 = scmp.ne.s32.totalorder %s1468_s6, %s2078_s16  ;;  %p2084_p0 = scmp.lt.s32.totalorder %s2078_s16, %s2078_s16 }
 0x15a   :  { %577 = vmatpush1.bf16.msra.mxu0 %v1872_v18  ;;  %608 = vmatprep.mubr.bf16.mxu0 %v2121_v54  ;;  %v1922_v18 = vld [vmem:[#allocation7 + $0x184] ss:$8 sps:$4 sm:$0xff]  }
 0x15b   :  { %578 = vmatprep.subr.bf16.mxu0 %v1877_v20  ;;  %p2085_p1 = por %p2084_p0, %p2083_p13 }
 0x15d   :  { %p2086_p2 = pnand %p2085_p1, %p2079_p12 }
 0x15e   :  { %579 = vmatpush1.bf16.msra.mxu0 %v1875_v24 }
 0x15f   :  { %580 = vmatprep.subr.bf16.mxu0 %v1880_v26  ;;  %v1928_v26 = vld [vmem:[#allocation7 + $0x1a4] ss:$8 sps:$4 sm:$0xff]  }
 0x162   :  { %581 = vmatpush1.bf16.msra.mxu0 %v1878_v31  ;;  %v1932_v31 = vld [vmem:[#allocation7 + $0x1c0] ss:$8 sps:$4 sm:$0xff]  }
 0x163   :  { %582 = vmatprep.subr.bf16.mxu0 %v1883_v32  ;;  %v1937_v32 = vld [vmem:[#allocation7 + $0x1d4] ss:$8 sps:$4 sm:$0xff]  }
 0x166   :  { %583 = vmatpush1.bf16.msra.mxu0 %v1881_v34  ;;  %v1940_v34 = vld [vmem:[#allocation7 + $0x1e4] ss:$8 sps:$4 sm:$0xff]  }
 0x167   :  { %584 = vmatprep.subr.bf16.mxu0 %v1886_v35  ;;  %v1943_v35 = vld [vmem:[#allocation7 + $0x1f4] ss:$8 sps:$4 sm:$0xff]  }
 0x16a   :  { %585 = vmatpush1.bf16.msra.mxu0 %v1884_v36  ;;  %v1941_v36 = vld [vmem:[#allocation7 + $0x1f0] ss:$8 sps:$4 sm:$0xff]  }
 0x16b   :  { %586 = vmatprep.subr.bf16.mxu0 %v1889_v37  ;;  %v1955_v37 = vld [vmem:[#allocation8 + $0x28] sm:$0xff]  }
 0x16c   :  { %1663 = vmatpush3.bf16.msra.mxu1 %v1955_v37 }
 0x16d   :  { %1664 = vmatprep.subr.bf16.mxu1 %v1956_v38 }
 0x16e   :  { %587 = vmatpush1.bf16.msra.mxu0 %v1887_v39  ;;  %v1957_v39 = vld [vmem:[#allocation8 + $0x30] sm:$0xff]  }
 0x16f   :  { %588 = vmatprep.subr.bf16.mxu0 %v1892_v40  ;;  %v1958_v40 = vld [vmem:[#allocation8 + $0x78] sm:$0xff]  }
 0x170   :  { %v727_v44 = vpop.f32.mrb[4].mxu1  ;;  %1665 = vmatpush3.bf16.msra.mxu1 %v1957_v39 }
 0x171   :  { %v728_v45 = vadd.f32 %v727_v44, %v638_v41  ;;  %v1741_v46 = vpop.f32.mrb[5].mxu1  ;;  %1666 = vmatprep.subr.bf16.mxu1 %v1958_v40 }
 0x172   :  { %589 = vmatpush1.bf16.msra.mxu0 %v1890_v42  ;;  %v730_v48 = vpop.f32.mrb[6].mxu1  ;;  %v1139_v42 = vld [vmem:[%s2347_s4] sm:$0x3] }
 0x173   :  { %590 = vmatprep.subr.bf16.mxu0 %v1895_v43  ;;  %v734_v50 = vmax.f32 %v728_v45, 0.0  ;;  %v731_v51 = vadd.f32 %v730_v48, %v638_v41  ;;  %v1742_v52 = vpop.f32.mrb[7].mxu1  ;;  %v1959_v41 = vld [vmem:[#allocation8 + $0x38] sm:$0xff]   ;;  %v1144_v43 = vrot.slane %v1139_v42, %v125_v11  ;;  %v1148_v44 = vrot.slane %v1139_v42, %v259_v4  ;;  %v1962_v4 = vld [vmem:[#allocation10 + $0x10] sm:$0xff]  }
 0x174   :  { %1667 = vmatpush3.bf16.msra.mxu1 %v1959_v41  ;;  %v1963_v11 = vld [vmem:[#allocation10 + $0x18] sm:$0xff]  }
 0x175   :  { %v735_v53 = vmax.f32 %v731_v51, 0.0  ;;  %1763 = vmatprep.subr.bf16.mxu1 %v2119_v0 }
 0x176   :  { %591 = vmatpush1.bf16.msra.mxu0 %v1893_v47 }
 0x177   :  { %833 = vmatprep.subr.bf16.mxu0 %v1898_v49  ;;  %v736_v57 = vpack.c.bf16 %v735_v53, %v734_v50 }
 0x179   :  { %609 = vmatmul.mubr.bf16.vlgmr.msra.gmra.mrb[4].mxu0 %v224_v33  ;;  %v1935_v33 = vld [vmem:[#allocation7 + $0x1d0] ss:$8 sps:$4 sm:$0xff]  }
 0x17a   :  { %834 = vmatpush1.bf16.msra.mxu0 %v1896_v55  ;;  %865 = vmatprep.mubr.bf16.mxu0 %v2121_v54 }
 0x17b   :  { %835 = vmatprep.subr.bf16.mxu0 %v1901_v56 }
 0x17e   :  { %836 = vmatpush1.bf16.msra.mxu0 %v1899_v58 }
 0x17f   :  { %837 = vmatprep.subr.bf16.mxu0 %v1904_v59 }
 0x182   :  { %838 = vmatpush1.bf16.msra.mxu0 %v1902_v60  ;;  %v1960_v60 = vld [vmem:[#allocation10] sm:$0xff]  }
 0x183   :  { %839 = vmatprep.subr.bf16.mxu0 %v1907_v61  ;;  %v1964_v61 = vld [vmem:[#allocation10 + $0x20] sm:$0xff]  }
 0x186   :  { %840 = vmatpush1.bf16.msra.mxu0 %v1905_v62  ;;  %v1965_v62 = vld [vmem:[#allocation10 + $0x28] sm:$0xff]  }
 0x187   :  { %841 = vmatprep.subr.bf16.mxu0 %v1910_v63  ;;  %v1966_v63 = vld [vmem:[#allocation10 + $0x30] sm:$0xff]  }
 0x18a   :  { %842 = vmatpush1.bf16.msra.mxu0 %v1908_v2  ;;  %v1967_v2 = vld [vmem:[#allocation10 + $0x38] sm:$0xff]  }
 0x18b   :  { %843 = vmatprep.subr.bf16.mxu0 %v1913_v3 }
 0x18e   :  { %844 = vmatpush1.bf16.msra.mxu0 %v1911_v7 }
 0x18f   :  { %845 = vmatprep.subr.bf16.mxu0 %v1916_v8 }
 0x190   :  { %v986_v13 = vpop.f32.mrb[8].mxu1 }
 0x191   :  { %v987_v14 = vadd.f32 %v986_v13, %v899_v9  ;;  %v1761_v15 = vpop.f32.mrb[9].mxu1 }
 0x192   :  { %846 = vmatpush1.bf16.msra.mxu0 %v1914_v10  ;;  %v989_v17 = vpop.f32.mrb[10].mxu1 }
 0x193   :  { %847 = vmatprep.subr.bf16.mxu0 %v1919_v12  ;;  %v993_v19 = vmax.f32 %v987_v14, 0.0  ;;  %v990_v20 = vadd.f32 %v989_v17, %v899_v9  ;;  %v1762_v21 = vpop.f32.mrb[11].mxu1 }
 0x195   :  { %v994_v22 = vmax.f32 %v990_v20, 0.0 }
 0x196   :  { %848 = vmatpush1.bf16.msra.mxu0 %v1917_v16 }
 0x197   :  { %1092 = vmatprep.subr.bf16.mxu0 %v1922_v18  ;;  %v995_v24 = vpack.c.bf16 %v994_v22, %v993_v19 }
 0x199   :  { %866 = vmatmul.mubr.bf16.vlgmr.msra.gmra.mrb[4].mxu0 %v736_v57 }
 0x19a   :  { %1093 = vmatpush1.bf16.msra.mxu0 %v1920_v23  ;;  %1124 = vmatprep.mubr.bf16.mxu0 %v2121_v54  ;;  %v1938_v54 = vld [vmem:[#allocation7 + $0x1e0] ss:$8 sps:$4 sm:$0xff]  }
 0x19b   :  { %1094 = vmatprep.subr.bf16.mxu0 %v1925_v6 }
 0x19e   :  { %1095 = vmatpush1.bf16.msra.mxu0 %v1923_v25 }
 0x19f   :  { %1096 = vmatprep.subr.bf16.mxu0 %v1928_v26 }
 0x1a2   :  { %1097 = vmatpush1.bf16.msra.mxu0 %v1926_v27 }
 0x1a3   :  { %1098 = vmatprep.subr.bf16.mxu0 %v1931_v28 }
 0x1a6   :  { %1099 = vmatpush1.bf16.msra.mxu0 %v1929_v29 }
 0x1a7   :  { %1100 = vmatprep.subr.bf16.mxu0 %v1934_v30 }
 0x1aa   :  { %1101 = vmatpush1.bf16.msra.mxu0 %v1932_v31 }
 0x1ab   :  { %1102 = vmatprep.subr.bf16.mxu0 %v1937_v32 }
 0x1ae   :  { %1103 = vmatpush1.bf16.msra.mxu0 %v1935_v33 }
 0x1af   :  { %1104 = vmatprep.subr.bf16.mxu0 %v1940_v34 }
 0x1b2   :  { %1105 = vmatpush1.bf16.msra.mxu0 %v1938_v54 }
 0x1b3   :  { %1106 = vmatprep.subr.bf16.mxu0 %v1943_v35 }
 0x1b6   :  { %1107 = vmatpush1.bf16.msra.mxu0 %v1941_v36 }
 0x1b9   :  { %1125 = vmatmul.mubr.bf16.vlgmr.msra.gmra.mrb[4].mxu0 %v995_v24 }
 0x28c   :  { %v1126_v45 = vpop.f32.mrb[4].mxu0 }
 0x28d   :  { %v1151_v46 = vadd.f32 %v1144_v43, %v1126_v45  ;;  %v1128_v47 = vpop.f32.mrb[5].mxu0 }
 0x28e   :  { %v1152_v48 = vadd.f32 %v1148_v44, %v1128_v47  ;;  %v1130_v49 = vpop.f32.mrb[6].mxu0 }
 0x28f   :  { %v1153_v50 = vadd.f32 %v1144_v43, %v1130_v49  ;;  %v1132_v51 = vpop.f32.mrb[7].mxu0  ;;  %v1155_v53 = vmax.f32 %v1151_v46, 0.0 }
 0x290   :  { %v1154_v52 = vadd.f32 %v1148_v44, %v1132_v51  ;;  %v1156_v56 = vmax.f32 %v1152_v48, 0.0 }
 0x291   :  { %v1157_v55 = vmax.f32 %v1153_v50, 0.0 }
 0x292   :  { %v1158_v57 = vmax.f32 %v1154_v52, 0.0 }
 0x293   :  { %v1159_v58 = vpack.c.bf16 %v1157_v55, %v1155_v53 }
 0x294   :  { %v1160_v59 = vpack.c.bf16 %v1158_v57, %v1156_v56 }
 0x296   :  { %1328 = vmatprep.mubr.bf16.mxu1 %v1160_v59 }
 0x297   :  { %1329 = vmatmul.mubr.bf16.vlgmr.msra.gmra.mrb[12].mxu1 %v1159_v58 }
 0x298   :  { %1764 = vmatpush3.bf16.msra.mxu1 %v1960_v60  ;;  %1779 = vmatprep.mubr.msk.bf16.mxu1 %vm2120_vm0, %v2119_v0 }
 0x299   :  { %1765 = vmatprep.subr.bf16.mxu1 %v2119_v0 }
 0x29c   :  { %1766 = vmatpush3.bf16.msra.mxu1 %v1961_v1 }
 0x29d   :  { %1767 = vmatprep.subr.bf16.mxu1 %v2119_v0 }
 0x2a0   :  { %1768 = vmatpush3.bf16.msra.mxu1 %v1962_v4 }
 0x2a1   :  { %1769 = vmatprep.subr.bf16.mxu1 %v2119_v0 }
 0x2a4   :  { %1770 = vmatpush3.bf16.msra.mxu1 %v1963_v11 }
 0x2a5   :  { %1771 = vmatprep.subr.bf16.mxu1 %v2119_v0 }
 0x2a8   :  { %1772 = vmatpush3.bf16.msra.mxu1 %v1964_v61 }
 0x2a9   :  { %1773 = vmatprep.subr.bf16.mxu1 %v2119_v0 }
 0x2ac   :  { %1774 = vmatpush3.bf16.msra.mxu1 %v1965_v62 }
 0x2ad   :  { %1775 = vmatprep.subr.bf16.mxu1 %v2119_v0 }
 0x2b0   :  { %1776 = vmatpush3.bf16.msra.mxu1 %v1966_v63 }
 0x2b1   :  { %1777 = vmatprep.subr.bf16.mxu1 %v2119_v0  ;;  %v1598_v0 = vld [vmem:[%s2351_s8] ss:$0 sm:$0xff] }
 0x2b4   :  { %1778 = vmatpush3.bf16.msra.mxu1 %v1967_v2 }
 0x36a   :  { %v1668_v3 = vpop.f32.mrb[12].mxu1 }
 0x36b   :  { %v1669_v7 = vpop.f32.mrb[13].mxu1 }
 0x36c   :  { %v1670_v8 = vadd.f32 %v1669_v7, %v1668_v3  ;;  %v1671_v9 = vpop.f32.mrb[14].mxu1 }
 0x36d   :  { %v1672_v10 = vpop.f32.mrb[15].mxu1 }
 0x36e   :  { %v1331_v12 = vadd.f32 %v1670_v8, %v1581_v5  ;;  %v1673_v13 = vadd.f32 %v1672_v10, %v1671_v9 }
 0x370   :  { %v1334_v14 = vadd.f32 %v1673_v13, %v1581_v5  ;;  %v1337_v15 = vmax.f32 %v1331_v12, 0.0 }
 0x372   :  { %v1338_v16 = vmax.f32 %v1334_v14, 0.0 }
 0x374   :  { %v1339_v17 = vpack.c.bf16 %v1338_v16, %v1337_v15 }
 0x376   :  { %1780 = vmatmul.mubr.bf16.vlgmr.msra.gmra.mrb[16].mxu1 %v1339_v17 }
 0x449   :  { %v1445_v18 = vpop.f32.mrb[16].mxu1 }
 0x44a   :  { %v1781_v19 = vpop.f32.mrb[17].mxu1  ;;  %v1446_v21 = vadd.f32 %v1598_v0, %v1445_v18 }
 0x44b   :  { %v1448_v20 = vpop.f32.mrb[18].mxu1 }
 0x44c   :  { %v1449_v22 = vadd.f32 %v1598_v0, %v1448_v20  ;;  %v1782_v23 = vpop.f32.mrb[19].mxu1 }
 0x44e   :  { %v1614_v6 = vpack.c.bf16 %v1449_v22, %v1446_v21 }
 0x450   :  { %1615 = vst [vmem:[#allocation11] sm:$0xff] %v1614_v6  }
 0x451   :  { %2089 = shalt.err (!%p2086_p2)
}
 0x452   :  { %s2090_s26 = scalar_lea.hbm %s2352_s9, 128 }
 0x453   :  { %p2091_p3 = scmp.ne.s32.totalorder %s2352_s9, %s2090_s26  ;;  %p2094_p4 = scmp.lt.u32.totalorder %s2090_s26, %s2352_s9 }
 0x455   :  { %p2096_p5 = pnand %p2094_p4, %p2091_p3 }
 0x457   :  { %2099 = shalt.err (!%p2096_p5)
}
 0x458   :  { %1473 = dma.vmem_to_hbm [thread:$0]  %s1468_s6, 128, %s2352_s9, [#allocation4], %s2109_s19, %s2109_s19, %s2110_s20  }
 0x459   :  { %2106 = dma.done.wait [#allocation4], 128  }
 0x45a   :  { %2107 = vsyncadd [#allocation4], 4294967168 }
 0x45b   :  { %1477 = vsyncpa [#allocation3], 1 }
 0x45c   :  { %1478 = vsyncpa [#allocation6], 1 }
 0x45d   :  { %1479 = vsyncpa [#allocation9], 1 }
 0x45e   :  { %1480 = vsyncpa [#allocation4], 1 }

</bundles_post_ra>
